<compile_context>
chip_gen: v5e
topology: v5e:2x2
jax: 0.10.0
libtpu: 0.0.40
codegen_flags: <defaults>
</compile_context>

<pallas_src>
import jax
import jax.numpy as jnp
import numpy as np
from jax.experimental import pallas as pl
from jax.experimental.pallas import tpu as pltpu

# Problem sizes (small, matching the module's implied shapes).
N = 2                 # batch
H = 16
W = 16
HW = H * W            # 256 -> mapped to the 128-lane axis inside the kernel
CIN = 4
C1 = 8
C2 = 8
NUM_CLASSES = 10
K = 3                 # 3x3 conv, padding=1 ("SAME")
PAD = 128             # flat (H*W) zero pad per side; >= W+1 and lane-aligned
XPW = HW + 2 * PAD    # width of the padded flat-image scratch (512)


def _fused_net_kernel(x_ref, w1_ref, b1_ref, w2_ref, b2_ref, wfc_ref, bfc_ref,
                      logits_ref, act1_ref, act2_ref,
                      xpad_ref, patch_ref):
    """Entire forward pass for the whole (tiny) batch in a single grid step.

    x_ref     : (N, CIN, HW)         inputs, channel-major flat layout
    w1_ref    : (C1, 9*CIN)          conv1 weights, tap-major / channel-minor
    b1_ref    : (C1, 1)
    w2_ref    : (C2, 9*C1)           conv2 weights
    b2_ref    : (C2, 1)
    wfc_ref   : (C2, NUM_CLASSES)
    bfc_ref   : (1, NUM_CLASSES)
    logits_ref: (N, NUM_CLASSES)     main output
    act1_ref  : (N, C1, HW)          hook #1 (post conv1+ReLU)
    act2_ref  : (N, C2, HW)          hook #2 (post conv2+ReLU)
    xpad_ref  : (C2, XPW)   scratch  zero-padded flat image (SAME padding)
    patch_ref : (9*C1, HW)  scratch  im2col patches for the single MXU matmul
    """
    # Zero the padded-image scratch once; only the interior [PAD, PAD+HW) is
    # ever rewritten afterwards, so the pad columns stay zero for every conv.
    xpad_ref[...] = jnp.zeros(xpad_ref.shape, xpad_ref.dtype)

    # Column (w-axis) validity masks for the horizontal tap offsets.  Row
    # (h-axis) out-of-range taps read the zero-pad region automatically.
    ww = jax.lax.broadcasted_iota(jnp.int32, (1, HW), 1) % W
    col_ok = {-1: ww >= 1, 0: None, 1: ww <= W - 2}

    def conv3x3_relu(x_cp, cin, w_mat, b_col):
        """x_cp: (cin, HW) -> ReLU(conv3x3_same(x) + b): (cout, HW)."""
        # Write the image into the interior of the zero-padded flat scratch.
        xpad_ref[0:cin, PAD:PAD + HW] = x_cp
        # im2col: 9 shifted windows stacked along sublanes.  A (dh, dw) shift
        # in 2-D is a shift of dh*W + dw on the flattened axis; the zero pad
        # handles dh running off the image, col_ok removes the w wrap-around.
        t = 0
        for dh in (-1, 0, 1):
            for dw in (-1, 0, 1):
                delta = dh * W + dw
                win = xpad_ref[0:cin, PAD + delta:PAD + delta + HW]
                if col_ok[dw] is not None:
                    win = jnp.where(col_ok[dw], win, 0.0)
                patch_ref[t * cin:(t + 1) * cin, :] = win
                t += 1
        patches = patch_ref[0:9 * cin, :]                       # (9*cin, HW)
        # One MXU contraction instead of 9 tiny K=cin matmuls.
        y = jnp.dot(w_mat, patches, preferred_element_type=jnp.float32)
        return jnp.maximum(y + b_col, 0.0)                      # (cout, HW)

    inv_hw = jnp.float32(1.0 / HW)
    for n in range(x_ref.shape[0]):                             # N=2, unrolled
        a1 = conv3x3_relu(x_ref[n], CIN, w1_ref[...], b1_ref[...])
        act1_ref[n] = a1                                        # hook #1
        a2 = conv3x3_relu(a1, C1, w2_ref[...], b2_ref[...])
        act2_ref[n] = a2                                        # hook #2
        # Global average pool (lane reduction) + linear classifier.
        pooled = jnp.sum(a2, axis=1, keepdims=True) * inv_hw    # (C2, 1)
        logits_ref[n:n + 1, :] = (
            jnp.sum(wfc_ref[...] * pooled, axis=0, keepdims=True)
            + bfc_ref[...])                                     # (1, NUM_CLASSES)


def _fused_forward(x_flat, params):
    n = x_flat.shape[0]
    return pl.pallas_call(
        _fused_net_kernel,
        out_shape=(
            jax.ShapeDtypeStruct((n, NUM_CLASSES), jnp.float32),
            jax.ShapeDtypeStruct((n, C1, HW), jnp.float32),
            jax.ShapeDtypeStruct((n, C2, HW), jnp.float32),
        ),
        grid=(1,),
        in_specs=[
            pl.BlockSpec((n, CIN, HW), lambda i: (0, 0, 0)),
            pl.BlockSpec((C1, 9 * CIN), lambda i: (0, 0)),
            pl.BlockSpec((C1, 1), lambda i: (0, 0)),
            pl.BlockSpec((C2, 9 * C1), lambda i: (0, 0)),
            pl.BlockSpec((C2, 1), lambda i: (0, 0)),
            pl.BlockSpec((C2, NUM_CLASSES), lambda i: (0, 0)),
            pl.BlockSpec((1, NUM_CLASSES), lambda i: (0, 0)),
        ],
        out_specs=(
            pl.BlockSpec((n, NUM_CLASSES), lambda i: (0, 0)),
            pl.BlockSpec((n, C1, HW), lambda i: (0, 0, 0)),
            pl.BlockSpec((n, C2, HW), lambda i: (0, 0, 0)),
        ),
        scratch_shapes=[
            pltpu.VMEM((C2, XPW), jnp.float32),     # zero-padded flat image
            pltpu.VMEM((9 * C1, HW), jnp.float32),  # im2col patches
        ],
        compiler_params=pltpu.CompilerParams(
            dimension_semantics=("arbitrary",)),
    )(x_flat, params["w1"], params["b1"], params["w2"], params["b2"],
      params["wfc"], params["bfc"])


def net_with_auxiliary_outputs_forward(x_nchw, params):
    """Returns (logits, [hook_output_1, hook_output_2]) like the torch module.

    x_nchw: (N, CIN, H, W) float32, PyTorch NCHW convention.  Hook outputs are
    the two ReLU activations in NCHW — exactly what forward hooks on the two
    conv+ReLU blocks would capture.
    """
    n = x_nchw.shape[0]
    x_flat = x_nchw.reshape(n, CIN, HW)                  # metadata-only reshape
    logits, a1, a2 = _fused_forward(x_flat, params)
    # TODO(synk): PyTorch's dynamic hook-registration mechanism has no Pallas
    # equivalent; the captured intermediates are explicit kernel outputs.
    hooks = [a1.reshape(n, C1, H, W), a2.reshape(n, C2, H, W)]   # free reshapes
    return logits, hooks


def _pack_conv_weight(w_oihw):
    """(Cout, Cin, KH, KW) -> (Cout, KH*KW*Cin), tap-major / channel-minor,
    matching the im2col patch ordering used inside the kernel."""
    cout, cin, kh, kw = w_oihw.shape
    return jnp.transpose(w_oihw, (0, 2, 3, 1)).reshape(cout, kh * kw * cin)


def init_params(key):
    k1, k2, k3, k4, k5, k6 = jax.random.split(key, 6)
    w1_raw = jax.random.normal(k1, (C1, CIN, K, K), jnp.float32) * 0.1
    w2_raw = jax.random.normal(k3, (C2, C1, K, K), jnp.float32) * 0.1
    return {
        # packed, kernel-ready layouts (done once at init, zero per-call ops)
        "w1": _pack_conv_weight(w1_raw),
        "b1": jax.random.normal(k2, (C1, 1), jnp.float32) * 0.01,
        "w2": _pack_conv_weight(w2_raw),
        "b2": jax.random.normal(k4, (C2, 1), jnp.float32) * 0.01,
        "wfc": jax.random.normal(k5, (C2, NUM_CLASSES), jnp.float32) * 0.1,
        "bfc": jax.random.normal(k6, (1, NUM_CLASSES), jnp.float32) * 0.01,
        # raw OIHW conv weights, kept only for the pure-JAX reference check
        "w1_raw": w1_raw,
        "w2_raw": w2_raw,
    }


def _reference_forward(x_nchw, params):
    """Pure-JAX (XLA) reference, used only for the in-script correctness check."""
    dn = ("NCHW", "OIHW", "NCHW")
    hp = jax.lax.Precision.HIGHEST
    a1 = jax.lax.conv_general_dilated(x_nchw, params["w1_raw"], (1, 1), "SAME",
                                      dimension_numbers=dn, precision=hp)
    a1 = jnp.maximum(a1 + params["b1"].reshape(1, C1, 1, 1), 0.0)
    a2 = jax.lax.conv_general_dilated(a1, params["w2_raw"], (1, 1), "SAME",
                                      dimension_numbers=dn, precision=hp)
    a2 = jnp.maximum(a2 + params["b2"].reshape(1, C2, 1, 1), 0.0)
    pooled = a2.mean(axis=(2, 3))
    logits = jnp.dot(pooled, params["wfc"], precision=hp) + params["bfc"]
    return logits, a1, a2


if __name__ == "__main__":
    key = jax.random.PRNGKey(0)
    kx, kp = jax.random.split(key)
    x = jax.random.normal(kx, (N, CIN, H, W), jnp.float32)   # NCHW, like torch
    params = init_params(kp)

    fwd = jax.jit(net_with_auxiliary_outputs_forward)
    logits, hooks = fwd(x, params)
    jax.block_until_ready(logits)
    for hook_out in hooks:
        jax.block_until_ready(hook_out)

    assert logits.shape == (N, NUM_CLASSES)
    assert hooks[0].shape == (N, C1, H, W)
    assert hooks[1].shape == (N, C2, H, W)

    # Correctness check against a pure-JAX reference (tolerance is loose enough
    # to absorb MXU vs. XLA f32 matmul pass differences, tight enough to catch
    # any structural/padding/packing bug).
    ref_logits, ref_a1, ref_a2 = _reference_forward(x, params)
    np.testing.assert_allclose(np.asarray(logits), np.asarray(ref_logits),
                               rtol=2e-2, atol=2e-2)
    np.testing.assert_allclose(np.asarray(hooks[0]), np.asarray(ref_a1),
                               rtol=2e-2, atol=2e-2)
    np.testing.assert_allclose(np.asarray(hooks[1]), np.asarray(ref_a2),
                               rtol=2e-2, atol=2e-2)

    print("KERNEL_OK")
</pallas_src>

<mosaic_0001>
module attributes {stable_mosaic.version = 11 : i64} {
  func.func @_fused_net_kernel(%arg0: i32, %arg1: memref<2x4x256xf32, #tpu.memory_space<vmem>>, %arg2: memref<8x36xf32, #tpu.memory_space<vmem>>, %arg3: memref<8x1xf32, #tpu.memory_space<vmem>>, %arg4: memref<8x72xf32, #tpu.memory_space<vmem>>, %arg5: memref<8x1xf32, #tpu.memory_space<vmem>>, %arg6: memref<8x10xf32, #tpu.memory_space<vmem>>, %arg7: memref<1x10xf32, #tpu.memory_space<vmem>>, %arg8: memref<2x10xf32, #tpu.memory_space<vmem>>, %arg9: memref<2x8x256xf32, #tpu.memory_space<vmem>>, %arg10: memref<2x8x256xf32, #tpu.memory_space<vmem>>, %arg11: memref<8x512xf32, #tpu.memory_space<vmem>>, %arg12: memref<72x256xf32, #tpu.memory_space<vmem>>) attributes {dimension_semantics = [#tpu.dimension_semantics<arbitrary>], iteration_bounds = array<i64: 1>, scalar_prefetch = 0 : i64, scratch_operands = 2 : i64, tpu.core_type = #tpu.core_type<tc>, window_params = [{pipeline_mode = #tpu.pipeline_mode<synchronous>, transform_indices = @transform_0, window_bounds = array<i64: 2, 4, 256>}, {pipeline_mode = #tpu.pipeline_mode<synchronous>, transform_indices = @transform_1, window_bounds = array<i64: 8, 36>}, {pipeline_mode = #tpu.pipeline_mode<synchronous>, transform_indices = @transform_2, window_bounds = array<i64: 8, 1>}, {pipeline_mode = #tpu.pipeline_mode<synchronous>, transform_indices = @transform_3, window_bounds = array<i64: 8, 72>}, {pipeline_mode = #tpu.pipeline_mode<synchronous>, transform_indices = @transform_4, window_bounds = array<i64: 8, 1>}, {pipeline_mode = #tpu.pipeline_mode<synchronous>, transform_indices = @transform_5, window_bounds = array<i64: 8, 10>}, {pipeline_mode = #tpu.pipeline_mode<synchronous>, transform_indices = @transform_6, window_bounds = array<i64: 1, 10>}, {pipeline_mode = #tpu.pipeline_mode<synchronous>, transform_indices = @transform_7, window_bounds = array<i64: 2, 10>}, {pipeline_mode = #tpu.pipeline_mode<synchronous>, transform_indices = @transform_8, window_bounds = array<i64: 2, 8, 256>}, {pipeline_mode = #tpu.pipeline_mode<synchronous>, transform_indices = @transform_9, window_bounds = array<i64: 2, 8, 256>}]} {
    %cst = arith.constant 0.000000e+00 : f32
    %0 = vector.broadcast %cst : f32 to vector<8x512xf32>
    %c0 = arith.constant 0 : index
    %c0_0 = arith.constant 0 : index
    %1 = vector.load %arg11[%c0, %c0_0] : memref<8x512xf32, #tpu.memory_space<vmem>>, vector<8x512xf32>
    tpu.vector_store %arg11[%c0, %c0_0], %0 {strides = array<i32>} : memref<8x512xf32, #tpu.memory_space<vmem>>, vector<8x512xf32>,
    %2 = tpu.iota {dimensions = array<i32: 1>} : vector<1x256xi32>
    %c16_i32 = arith.constant 16 : i32
    %c0_i32 = arith.constant 0 : i32
    %3 = arith.cmpi eq, %c16_i32, %c0_i32 : i32
    %c1_i32 = arith.constant 1 : i32
    %4 = arith.select %3, %c1_i32, %c16_i32 : i32
    %5 = vector.broadcast %4 : i32 to vector<1x256xi32>
    %6 = arith.remsi %2, %5 : vector<1x256xi32>
    %c0_i32_1 = arith.constant 0 : i32
    %7 = vector.broadcast %c0_i32_1 : i32 to vector<1x256xi32>
    %8 = arith.cmpi ne, %6, %7 : vector<1x256xi32>
    %c0_i32_2 = arith.constant 0 : i32
    %9 = vector.broadcast %c0_i32_2 : i32 to vector<1x256xi32>
    %10 = arith.cmpi slt, %6, %9 : vector<1x256xi32>
    %c0_i32_3 = arith.constant 0 : i32
    %11 = arith.cmpi slt, %4, %c0_i32_3 : i32
    %12 = vector.broadcast %11 : i1 to vector<1x256xi1>
    %13 = vector.broadcast %12 : vector<1x256xi1> to vector<1x256xi1>
    %14 = arith.xori %10, %13 : vector<1x256xi1>
    %15 = arith.andi %14, %8 : vector<1x256xi1>
    %16 = vector.broadcast %4 : i32 to vector<1x256xi32>
    %17 = arith.addi %6, %16 : vector<1x256xi32>
    %18 = arith.select %15, %17, %6 : vector<1x256xi1>, vector<1x256xi32>
    %c1_i32_4 = arith.constant 1 : i32
    %19 = vector.broadcast %c1_i32_4 : i32 to vector<1x256xi32>
    %20 = arith.cmpi sge, %18, %19 : vector<1x256xi32>
    %c14_i32 = arith.constant 14 : i32
    %21 = vector.broadcast %c14_i32 : i32 to vector<1x256xi32>
    %22 = arith.cmpi sle, %18, %21 : vector<1x256xi32>
    %c0_5 = arith.constant 0 : index
    %c0_6 = arith.constant 0 : index
    %c0_7 = arith.constant 0 : index
    %23 = vector.load %arg1[%c0_5, %c0_6, %c0_7] : memref<2x4x256xf32, #tpu.memory_space<vmem>>, vector<1x4x256xf32>
    %24 = vector.shape_cast %23 : vector<1x4x256xf32> to vector<4x256xf32>
    %c0_8 = arith.constant 0 : index
    %c0_9 = arith.constant 0 : index
    %25 = vector.load %arg2[%c0_8, %c0_9] : memref<8x36xf32, #tpu.memory_space<vmem>>, vector<8x36xf32>
    %c0_10 = arith.constant 0 : index
    %c0_11 = arith.constant 0 : index
    %26 = vector.load %arg3[%c0_10, %c0_11] : memref<8x1xf32, #tpu.memory_space<vmem>>, vector<8x1xf32>
    %c0_12 = arith.constant 0 : index
    %c128 = arith.constant 128 : index
    %27 = vector.load %arg11[%c0_12, %c128] : memref<8x512xf32, #tpu.memory_space<vmem>>, vector<4x256xf32>
    tpu.vector_store %arg11[%c0_12, %c128], %24 {strides = array<i32>} : memref<8x512xf32, #tpu.memory_space<vmem>>, vector<4x256xf32>,
    %c0_13 = arith.constant 0 : index
    %c111 = arith.constant 111 : index
    %28 = vector.load %arg11[%c0_13, %c111] : memref<8x512xf32, #tpu.memory_space<vmem>>, vector<4x256xf32>
    %cst_14 = arith.constant 0.000000e+00 : f32
    %29 = vector.shape_cast %20 : vector<1x256xi1> to vector<1x256xi1>
    %30 = vector.broadcast %29 : vector<1x256xi1> to vector<4x256xi1>
    %31 = vector.broadcast %cst_14 : f32 to vector<4x256xf32>
    %32 = arith.select %30, %28, %31 : vector<4x256xi1>, vector<4x256xf32>
    %c0_15 = arith.constant 0 : index
    %c0_16 = arith.constant 0 : index
    %33 = vector.load %arg12[%c0_15, %c0_16] : memref<72x256xf32, #tpu.memory_space<vmem>>, vector<4x256xf32>
    tpu.vector_store %arg12[%c0_15, %c0_16], %32 {strides = array<i32>} : memref<72x256xf32, #tpu.memory_space<vmem>>, vector<4x256xf32>,
    %c0_17 = arith.constant 0 : index
    %c112 = arith.constant 112 : index
    %34 = vector.load %arg11[%c0_17, %c112] : memref<8x512xf32, #tpu.memory_space<vmem>>, vector<4x256xf32>
    %c4 = arith.constant 4 : index
    %c0_18 = arith.constant 0 : index
    %35 = vector.load %arg12[%c4, %c0_18] : memref<72x256xf32, #tpu.memory_space<vmem>>, vector<4x256xf32>
    tpu.vector_store %arg12[%c4, %c0_18], %34 {strides = array<i32>} : memref<72x256xf32, #tpu.memory_space<vmem>>, vector<4x256xf32>,
    %c0_19 = arith.constant 0 : index
    %c113 = arith.constant 113 : index
    %36 = vector.load %arg11[%c0_19, %c113] : memref<8x512xf32, #tpu.memory_space<vmem>>, vector<4x256xf32>
    %cst_20 = arith.constant 0.000000e+00 : f32
    %37 = vector.shape_cast %22 : vector<1x256xi1> to vector<1x256xi1>
    %38 = vector.broadcast %37 : vector<1x256xi1> to vector<4x256xi1>
    %39 = vector.broadcast %cst_20 : f32 to vector<4x256xf32>
    %40 = arith.select %38, %36, %39 : vector<4x256xi1>, vector<4x256xf32>
    %c8 = arith.constant 8 : index
    %c0_21 = arith.constant 0 : index
    %41 = vector.load %arg12[%c8, %c0_21] : memref<72x256xf32, #tpu.memory_space<vmem>>, vector<4x256xf32>
    tpu.vector_store %arg12[%c8, %c0_21], %40 {strides = array<i32>} : memref<72x256xf32, #tpu.memory_space<vmem>>, vector<4x256xf32>,
    %c0_22 = arith.constant 0 : index
    %c127 = arith.constant 127 : index
    %42 = vector.load %arg11[%c0_22, %c127] : memref<8x512xf32, #tpu.memory_space<vmem>>, vector<4x256xf32>
    %cst_23 = arith.constant 0.000000e+00 : f32
    %43 = vector.shape_cast %20 : vector<1x256xi1> to vector<1x256xi1>
    %44 = vector.broadcast %43 : vector<1x256xi1> to vector<4x256xi1>
    %45 = vector.broadcast %cst_23 : f32 to vector<4x256xf32>
    %46 = arith.select %44, %42, %45 : vector<4x256xi1>, vector<4x256xf32>
    %c12 = arith.constant 12 : index
    %c0_24 = arith.constant 0 : index
    %47 = vector.load %arg12[%c12, %c0_24] : memref<72x256xf32, #tpu.memory_space<vmem>>, vector<4x256xf32>
    tpu.vector_store %arg12[%c12, %c0_24], %46 {strides = array<i32>} : memref<72x256xf32, #tpu.memory_space<vmem>>, vector<4x256xf32>,
    %c0_25 = arith.constant 0 : index
    %c128_26 = arith.constant 128 : index
    %48 = vector.load %arg11[%c0_25, %c128_26] : memref<8x512xf32, #tpu.memory_space<vmem>>, vector<4x256xf32>
    %c16 = arith.constant 16 : index
    %c0_27 = arith.constant 0 : index
    %49 = vector.load %arg12[%c16, %c0_27] : memref<72x256xf32, #tpu.memory_space<vmem>>, vector<4x256xf32>
    tpu.vector_store %arg12[%c16, %c0_27], %48 {strides = array<i32>} : memref<72x256xf32, #tpu.memory_space<vmem>>, vector<4x256xf32>,
    %c0_28 = arith.constant 0 : index
    %c129 = arith.constant 129 : index
    %50 = vector.load %arg11[%c0_28, %c129] : memref<8x512xf32, #tpu.memory_space<vmem>>, vector<4x256xf32>
    %cst_29 = arith.constant 0.000000e+00 : f32
    %51 = vector.shape_cast %22 : vector<1x256xi1> to vector<1x256xi1>
    %52 = vector.broadcast %51 : vector<1x256xi1> to vector<4x256xi1>
    %53 = vector.broadcast %cst_29 : f32 to vector<4x256xf32>
    %54 = arith.select %52, %50, %53 : vector<4x256xi1>, vector<4x256xf32>
    %c20 = arith.constant 20 : index
    %c0_30 = arith.constant 0 : index
    %55 = vector.load %arg12[%c20, %c0_30] : memref<72x256xf32, #tpu.memory_space<vmem>>, vector<4x256xf32>
    tpu.vector_store %arg12[%c20, %c0_30], %54 {strides = array<i32>} : memref<72x256xf32, #tpu.memory_space<vmem>>, vector<4x256xf32>,
    %c0_31 = arith.constant 0 : index
    %c143 = arith.constant 143 : index
    %56 = vector.load %arg11[%c0_31, %c143] : memref<8x512xf32, #tpu.memory_space<vmem>>, vector<4x256xf32>
    %cst_32 = arith.constant 0.000000e+00 : f32
    %57 = vector.shape_cast %20 : vector<1x256xi1> to vector<1x256xi1>
    %58 = vector.broadcast %57 : vector<1x256xi1> to vector<4x256xi1>
    %59 = vector.broadcast %cst_32 : f32 to vector<4x256xf32>
    %60 = arith.select %58, %56, %59 : vector<4x256xi1>, vector<4x256xf32>
    %c24 = arith.constant 24 : index
    %c0_33 = arith.constant 0 : index
    %61 = vector.load %arg12[%c24, %c0_33] : memref<72x256xf32, #tpu.memory_space<vmem>>, vector<4x256xf32>
    tpu.vector_store %arg12[%c24, %c0_33], %60 {strides = array<i32>} : memref<72x256xf32, #tpu.memory_space<vmem>>, vector<4x256xf32>,
    %c0_34 = arith.constant 0 : index
    %c144 = arith.constant 144 : index
    %62 = vector.load %arg11[%c0_34, %c144] : memref<8x512xf32, #tpu.memory_space<vmem>>, vector<4x256xf32>
    %c28 = arith.constant 28 : index
    %c0_35 = arith.constant 0 : index
    %63 = vector.load %arg12[%c28, %c0_35] : memref<72x256xf32, #tpu.memory_space<vmem>>, vector<4x256xf32>
    tpu.vector_store %arg12[%c28, %c0_35], %62 {strides = array<i32>} : memref<72x256xf32, #tpu.memory_space<vmem>>, vector<4x256xf32>,
    %c0_36 = arith.constant 0 : index
    %c145 = arith.constant 145 : index
    %64 = vector.load %arg11[%c0_36, %c145] : memref<8x512xf32, #tpu.memory_space<vmem>>, vector<4x256xf32>
    %cst_37 = arith.constant 0.000000e+00 : f32
    %65 = vector.shape_cast %22 : vector<1x256xi1> to vector<1x256xi1>
    %66 = vector.broadcast %65 : vector<1x256xi1> to vector<4x256xi1>
    %67 = vector.broadcast %cst_37 : f32 to vector<4x256xf32>
    %68 = arith.select %66, %64, %67 : vector<4x256xi1>, vector<4x256xf32>
    %c32 = arith.constant 32 : index
    %c0_38 = arith.constant 0 : index
    %69 = vector.load %arg12[%c32, %c0_38] : memref<72x256xf32, #tpu.memory_space<vmem>>, vector<4x256xf32>
    tpu.vector_store %arg12[%c32, %c0_38], %68 {strides = array<i32>} : memref<72x256xf32, #tpu.memory_space<vmem>>, vector<4x256xf32>,
    %c0_39 = arith.constant 0 : index
    %c0_40 = arith.constant 0 : index
    %70 = vector.load %arg12[%c0_39, %c0_40] : memref<72x256xf32, #tpu.memory_space<vmem>>, vector<36x256xf32>
    %cst_41 = arith.constant dense<0.000000e+00> : vector<8x256xf32>
    %71 = tpu.matmul %25, %70, %cst_41 {dimension_numbers = #tpu.dot_dimension_numbers<[1], [0], [0], [1], [0, 0, 1, 1], [], []>} : vector<8x36xf32>, vector<36x256xf32>, vector<8x256xf32> -> vector<8x256xf32>
    %72 = vector.broadcast %26 : vector<8x1xf32> to vector<8x256xf32>
    %73 = arith.addf %71, %72 : vector<8x256xf32>
    %cst_42 = arith.constant 0.000000e+00 : f32
    %74 = vector.broadcast %cst_42 : f32 to vector<8x256xf32>
    %75 = arith.maximumf %73, %74 : vector<8x256xf32>
    %c0_43 = arith.constant 0 : index
    %c0_44 = arith.constant 0 : index
    %c0_45 = arith.constant 0 : index
    %76 = vector.load %arg9[%c0_43, %c0_44, %c0_45] : memref<2x8x256xf32, #tpu.memory_space<vmem>>, vector<1x8x256xf32>
    %77 = vector.shape_cast %76 : vector<1x8x256xf32> to vector<8x256xf32>
    %78 = vector.shape_cast %75 : vector<8x256xf32> to vector<1x8x256xf32>
    tpu.vector_store %arg9[%c0_43, %c0_44, %c0_45], %78 {strides = array<i32>} : memref<2x8x256xf32, #tpu.memory_space<vmem>>, vector<1x8x256xf32>,
    %c0_46 = arith.constant 0 : index
    %c0_47 = arith.constant 0 : index
    %79 = vector.load %arg4[%c0_46, %c0_47] : memref<8x72xf32, #tpu.memory_space<vmem>>, vector<8x72xf32>
    %c0_48 = arith.constant 0 : index
    %c0_49 = arith.constant 0 : index
    %80 = vector.load %arg5[%c0_48, %c0_49] : memref<8x1xf32, #tpu.memory_space<vmem>>, vector<8x1xf32>
    %c0_50 = arith.constant 0 : index
    %c128_51 = arith.constant 128 : index
    %81 = vector.load %arg11[%c0_50, %c128_51] : memref<8x512xf32, #tpu.memory_space<vmem>>, vector<8x256xf32>
    tpu.vector_store %arg11[%c0_50, %c128_51], %75 {strides = array<i32>} : memref<8x512xf32, #tpu.memory_space<vmem>>, vector<8x256xf32>,
    %c0_52 = arith.constant 0 : index
    %c111_53 = arith.constant 111 : index
    %82 = vector.load %arg11[%c0_52, %c111_53] : memref<8x512xf32, #tpu.memory_space<vmem>>, vector<8x256xf32>
    %cst_54 = arith.constant 0.000000e+00 : f32
    %83 = vector.shape_cast %20 : vector<1x256xi1> to vector<1x256xi1>
    %84 = vector.broadcast %83 : vector<1x256xi1> to vector<8x256xi1>
    %85 = vector.broadcast %cst_54 : f32 to vector<8x256xf32>
    %86 = arith.select %84, %82, %85 : vector<8x256xi1>, vector<8x256xf32>
    %c0_55 = arith.constant 0 : index
    %c0_56 = arith.constant 0 : index
    %87 = vector.load %arg12[%c0_55, %c0_56] : memref<72x256xf32, #tpu.memory_space<vmem>>, vector<8x256xf32>
    tpu.vector_store %arg12[%c0_55, %c0_56], %86 {strides = array<i32>} : memref<72x256xf32, #tpu.memory_space<vmem>>, vector<8x256xf32>,
    %c0_57 = arith.constant 0 : index
    %c112_58 = arith.constant 112 : index
    %88 = vector.load %arg11[%c0_57, %c112_58] : memref<8x512xf32, #tpu.memory_space<vmem>>, vector<8x256xf32>
    %c8_59 = arith.constant 8 : index
    %c0_60 = arith.constant 0 : index
    %89 = vector.load %arg12[%c8_59, %c0_60] : memref<72x256xf32, #tpu.memory_space<vmem>>, vector<8x256xf32>
    tpu.vector_store %arg12[%c8_59, %c0_60], %88 {strides = array<i32>} : memref<72x256xf32, #tpu.memory_space<vmem>>, vector<8x256xf32>,
    %c0_61 = arith.constant 0 : index
    %c113_62 = arith.constant 113 : index
    %90 = vector.load %arg11[%c0_61, %c113_62] : memref<8x512xf32, #tpu.memory_space<vmem>>, vector<8x256xf32>
    %cst_63 = arith.constant 0.000000e+00 : f32
    %91 = vector.shape_cast %22 : vector<1x256xi1> to vector<1x256xi1>
    %92 = vector.broadcast %91 : vector<1x256xi1> to vector<8x256xi1>
    %93 = vector.broadcast %cst_63 : f32 to vector<8x256xf32>
    %94 = arith.select %92, %90, %93 : vector<8x256xi1>, vector<8x256xf32>
    %c16_64 = arith.constant 16 : index
    %c0_65 = arith.constant 0 : index
    %95 = vector.load %arg12[%c16_64, %c0_65] : memref<72x256xf32, #tpu.memory_space<vmem>>, vector<8x256xf32>
    tpu.vector_store %arg12[%c16_64, %c0_65], %94 {strides = array<i32>} : memref<72x256xf32, #tpu.memory_space<vmem>>, vector<8x256xf32>,
    %c0_66 = arith.constant 0 : index
    %c127_67 = arith.constant 127 : index
    %96 = vector.load %arg11[%c0_66, %c127_67] : memref<8x512xf32, #tpu.memory_space<vmem>>, vector<8x256xf32>
    %cst_68 = arith.constant 0.000000e+00 : f32
    %97 = vector.shape_cast %20 : vector<1x256xi1> to vector<1x256xi1>
    %98 = vector.broadcast %97 : vector<1x256xi1> to vector<8x256xi1>
    %99 = vector.broadcast %cst_68 : f32 to vector<8x256xf32>
    %100 = arith.select %98, %96, %99 : vector<8x256xi1>, vector<8x256xf32>
    %c24_69 = arith.constant 24 : index
    %c0_70 = arith.constant 0 : index
    %101 = vector.load %arg12[%c24_69, %c0_70] : memref<72x256xf32, #tpu.memory_space<vmem>>, vector<8x256xf32>
    tpu.vector_store %arg12[%c24_69, %c0_70], %100 {strides = array<i32>} : memref<72x256xf32, #tpu.memory_space<vmem>>, vector<8x256xf32>,
    %c0_71 = arith.constant 0 : index
    %c128_72 = arith.constant 128 : index
    %102 = vector.load %arg11[%c0_71, %c128_72] : memref<8x512xf32, #tpu.memory_space<vmem>>, vector<8x256xf32>
    %c32_73 = arith.constant 32 : index
    %c0_74 = arith.constant 0 : index
    %103 = vector.load %arg12[%c32_73, %c0_74] : memref<72x256xf32, #tpu.memory_space<vmem>>, vector<8x256xf32>
    tpu.vector_store %arg12[%c32_73, %c0_74], %102 {strides = array<i32>} : memref<72x256xf32, #tpu.memory_space<vmem>>, vector<8x256xf32>,
    %c0_75 = arith.constant 0 : index
    %c129_76 = arith.constant 129 : index
    %104 = vector.load %arg11[%c0_75, %c129_76] : memref<8x512xf32, #tpu.memory_space<vmem>>, vector<8x256xf32>
    %cst_77 = arith.constant 0.000000e+00 : f32
    %105 = vector.shape_cast %22 : vector<1x256xi1> to vector<1x256xi1>
    %106 = vector.broadcast %105 : vector<1x256xi1> to vector<8x256xi1>
    %107 = vector.broadcast %cst_77 : f32 to vector<8x256xf32>
    %108 = arith.select %106, %104, %107 : vector<8x256xi1>, vector<8x256xf32>
    %c40 = arith.constant 40 : index
    %c0_78 = arith.constant 0 : index
    %109 = vector.load %arg12[%c40, %c0_78] : memref<72x256xf32, #tpu.memory_space<vmem>>, vector<8x256xf32>
    tpu.vector_store %arg12[%c40, %c0_78], %108 {strides = array<i32>} : memref<72x256xf32, #tpu.memory_space<vmem>>, vector<8x256xf32>,
    %c0_79 = arith.constant 0 : index
    %c143_80 = arith.constant 143 : index
    %110 = vector.load %arg11[%c0_79, %c143_80] : memref<8x512xf32, #tpu.memory_space<vmem>>, vector<8x256xf32>
    %cst_81 = arith.constant 0.000000e+00 : f32
    %111 = vector.shape_cast %20 : vector<1x256xi1> to vector<1x256xi1>
    %112 = vector.broadcast %111 : vector<1x256xi1> to vector<8x256xi1>
    %113 = vector.broadcast %cst_81 : f32 to vector<8x256xf32>
    %114 = arith.select %112, %110, %113 : vector<8x256xi1>, vector<8x256xf32>
    %c48 = arith.constant 48 : index
    %c0_82 = arith.constant 0 : index
    %115 = vector.load %arg12[%c48, %c0_82] : memref<72x256xf32, #tpu.memory_space<vmem>>, vector<8x256xf32>
    tpu.vector_store %arg12[%c48, %c0_82], %114 {strides = array<i32>} : memref<72x256xf32, #tpu.memory_space<vmem>>, vector<8x256xf32>,
    %c0_83 = arith.constant 0 : index
    %c144_84 = arith.constant 144 : index
    %116 = vector.load %arg11[%c0_83, %c144_84] : memref<8x512xf32, #tpu.memory_space<vmem>>, vector<8x256xf32>
    %c56 = arith.constant 56 : index
    %c0_85 = arith.constant 0 : index
    %117 = vector.load %arg12[%c56, %c0_85] : memref<72x256xf32, #tpu.memory_space<vmem>>, vector<8x256xf32>
    tpu.vector_store %arg12[%c56, %c0_85], %116 {strides = array<i32>} : memref<72x256xf32, #tpu.memory_space<vmem>>, vector<8x256xf32>,
    %c0_86 = arith.constant 0 : index
    %c145_87 = arith.constant 145 : index
    %118 = vector.load %arg11[%c0_86, %c145_87] : memref<8x512xf32, #tpu.memory_space<vmem>>, vector<8x256xf32>
    %cst_88 = arith.constant 0.000000e+00 : f32
    %119 = vector.shape_cast %22 : vector<1x256xi1> to vector<1x256xi1>
    %120 = vector.broadcast %119 : vector<1x256xi1> to vector<8x256xi1>
    %121 = vector.broadcast %cst_88 : f32 to vector<8x256xf32>
    %122 = arith.select %120, %118, %121 : vector<8x256xi1>, vector<8x256xf32>
    %c64 = arith.constant 64 : index
    %c0_89 = arith.constant 0 : index
    %123 = vector.load %arg12[%c64, %c0_89] : memref<72x256xf32, #tpu.memory_space<vmem>>, vector<8x256xf32>
    tpu.vector_store %arg12[%c64, %c0_89], %122 {strides = array<i32>} : memref<72x256xf32, #tpu.memory_space<vmem>>, vector<8x256xf32>,
    %c0_90 = arith.constant 0 : index
    %c0_91 = arith.constant 0 : index
    %124 = vector.load %arg12[%c0_90, %c0_91] : memref<72x256xf32, #tpu.memory_space<vmem>>, vector<72x256xf32>
    %cst_92 = arith.constant dense<0.000000e+00> : vector<8x256xf32>
    %125 = tpu.matmul %79, %124, %cst_92 {dimension_numbers = #tpu.dot_dimension_numbers<[1], [0], [0], [1], [0, 0, 1, 1], [], []>} : vector<8x72xf32>, vector<72x256xf32>, vector<8x256xf32> -> vector<8x256xf32>
    %126 = vector.broadcast %80 : vector<8x1xf32> to vector<8x256xf32>
    %127 = arith.addf %125, %126 : vector<8x256xf32>
    %cst_93 = arith.constant 0.000000e+00 : f32
    %128 = vector.broadcast %cst_93 : f32 to vector<8x256xf32>
    %129 = arith.maximumf %127, %128 : vector<8x256xf32>
    %c0_94 = arith.constant 0 : index
    %c0_95 = arith.constant 0 : index
    %c0_96 = arith.constant 0 : index
    %130 = vector.load %arg10[%c0_94, %c0_95, %c0_96] : memref<2x8x256xf32, #tpu.memory_space<vmem>>, vector<1x8x256xf32>
    %131 = vector.shape_cast %130 : vector<1x8x256xf32> to vector<8x256xf32>
    %132 = vector.shape_cast %129 : vector<8x256xf32> to vector<1x8x256xf32>
    tpu.vector_store %arg10[%c0_94, %c0_95, %c0_96], %132 {strides = array<i32>} : memref<2x8x256xf32, #tpu.memory_space<vmem>>, vector<1x8x256xf32>,
    %cst_97 = arith.constant dense<0.000000e+00> : vector<8xf32>
    %133 = vector.multi_reduction <add>, %129, %cst_97 [1] : vector<8x256xf32> to vector<8xf32>
    %134 = vector.shape_cast %133 : vector<8xf32> to vector<8x1xf32>
    %cst_98 = arith.constant 3.906250e-03 : f32
    %135 = vector.broadcast %cst_98 : f32 to vector<8x1xf32>
    %136 = arith.mulf %134, %135 : vector<8x1xf32>
    %c0_99 = arith.constant 0 : index
    %c0_100 = arith.constant 0 : index
    %137 = vector.load %arg6[%c0_99, %c0_100] : memref<8x10xf32, #tpu.memory_space<vmem>>, vector<8x10xf32>
    %138 = vector.broadcast %136 : vector<8x1xf32> to vector<8x10xf32>
    %139 = arith.mulf %137, %138 : vector<8x10xf32>
    %cst_101 = arith.constant dense<0.000000e+00> : vector<10xf32>
    %140 = vector.multi_reduction <add>, %139, %cst_101 [0] : vector<8x10xf32> to vector<10xf32>
    %141 = vector.shape_cast %140 : vector<10xf32> to vector<1x10xf32>
    %c0_102 = arith.constant 0 : index
    %c0_103 = arith.constant 0 : index
    %142 = vector.load %arg7[%c0_102, %c0_103] : memref<1x10xf32, #tpu.memory_space<vmem>>, vector<1x10xf32>
    %143 = arith.addf %141, %142 : vector<1x10xf32>
    %c0_104 = arith.constant 0 : index
    %c0_105 = arith.constant 0 : index
    %144 = vector.load %arg8[%c0_104, %c0_105] : memref<2x10xf32, #tpu.memory_space<vmem>>, vector<1x10xf32>
    tpu.vector_store %arg8[%c0_104, %c0_105], %143 {strides = array<i32>} : memref<2x10xf32, #tpu.memory_space<vmem>>, vector<1x10xf32>,
    %c1 = arith.constant 1 : index
    %c0_106 = arith.constant 0 : index
    %c0_107 = arith.constant 0 : index
    %145 = vector.load %arg1[%c1, %c0_106, %c0_107] : memref<2x4x256xf32, #tpu.memory_space<vmem>>, vector<1x4x256xf32>
    %146 = vector.shape_cast %145 : vector<1x4x256xf32> to vector<4x256xf32>
    %c0_108 = arith.constant 0 : index
    %c0_109 = arith.constant 0 : index
    %147 = vector.load %arg2[%c0_108, %c0_109] : memref<8x36xf32, #tpu.memory_space<vmem>>, vector<8x36xf32>
    %c0_110 = arith.constant 0 : index
    %c0_111 = arith.constant 0 : index
    %148 = vector.load %arg3[%c0_110, %c0_111] : memref<8x1xf32, #tpu.memory_space<vmem>>, vector<8x1xf32>
    %c0_112 = arith.constant 0 : index
    %c128_113 = arith.constant 128 : index
    %149 = vector.load %arg11[%c0_112, %c128_113] : memref<8x512xf32, #tpu.memory_space<vmem>>, vector<4x256xf32>
    tpu.vector_store %arg11[%c0_112, %c128_113], %146 {strides = array<i32>} : memref<8x512xf32, #tpu.memory_space<vmem>>, vector<4x256xf32>,
    %c0_114 = arith.constant 0 : index
    %c111_115 = arith.constant 111 : index
    %150 = vector.load %arg11[%c0_114, %c111_115] : memref<8x512xf32, #tpu.memory_space<vmem>>, vector<4x256xf32>
    %cst_116 = arith.constant 0.000000e+00 : f32
    %151 = vector.shape_cast %20 : vector<1x256xi1> to vector<1x256xi1>
    %152 = vector.broadcast %151 : vector<1x256xi1> to vector<4x256xi1>
    %153 = vector.broadcast %cst_116 : f32 to vector<4x256xf32>
    %154 = arith.select %152, %150, %153 : vector<4x256xi1>, vector<4x256xf32>
    %c0_117 = arith.constant 0 : index
    %c0_118 = arith.constant 0 : index
    %155 = vector.load %arg12[%c0_117, %c0_118] : memref<72x256xf32, #tpu.memory_space<vmem>>, vector<4x256xf32>
    tpu.vector_store %arg12[%c0_117, %c0_118], %154 {strides = array<i32>} : memref<72x256xf32, #tpu.memory_space<vmem>>, vector<4x256xf32>,
    %c0_119 = arith.constant 0 : index
    %c112_120 = arith.constant 112 : index
    %156 = vector.load %arg11[%c0_119, %c112_120] : memref<8x512xf32, #tpu.memory_space<vmem>>, vector<4x256xf32>
    %c4_121 = arith.constant 4 : index
    %c0_122 = arith.constant 0 : index
    %157 = vector.load %arg12[%c4_121, %c0_122] : memref<72x256xf32, #tpu.memory_space<vmem>>, vector<4x256xf32>
    tpu.vector_store %arg12[%c4_121, %c0_122], %156 {strides = array<i32>} : memref<72x256xf32, #tpu.memory_space<vmem>>, vector<4x256xf32>,
    %c0_123 = arith.constant 0 : index
    %c113_124 = arith.constant 113 : index
    %158 = vector.load %arg11[%c0_123, %c113_124] : memref<8x512xf32, #tpu.memory_space<vmem>>, vector<4x256xf32>
    %cst_125 = arith.constant 0.000000e+00 : f32
    %159 = vector.shape_cast %22 : vector<1x256xi1> to vector<1x256xi1>
    %160 = vector.broadcast %159 : vector<1x256xi1> to vector<4x256xi1>
    %161 = vector.broadcast %cst_125 : f32 to vector<4x256xf32>
    %162 = arith.select %160, %158, %161 : vector<4x256xi1>, vector<4x256xf32>
    %c8_126 = arith.constant 8 : index
    %c0_127 = arith.constant 0 : index
    %163 = vector.load %arg12[%c8_126, %c0_127] : memref<72x256xf32, #tpu.memory_space<vmem>>, vector<4x256xf32>
    tpu.vector_store %arg12[%c8_126, %c0_127], %162 {strides = array<i32>} : memref<72x256xf32, #tpu.memory_space<vmem>>, vector<4x256xf32>,
    %c0_128 = arith.constant 0 : index
    %c127_129 = arith.constant 127 : index
    %164 = vector.load %arg11[%c0_128, %c127_129] : memref<8x512xf32, #tpu.memory_space<vmem>>, vector<4x256xf32>
    %cst_130 = arith.constant 0.000000e+00 : f32
    %165 = vector.shape_cast %20 : vector<1x256xi1> to vector<1x256xi1>
    %166 = vector.broadcast %165 : vector<1x256xi1> to vector<4x256xi1>
    %167 = vector.broadcast %cst_130 : f32 to vector<4x256xf32>
    %168 = arith.select %166, %164, %167 : vector<4x256xi1>, vector<4x256xf32>
    %c12_131 = arith.constant 12 : index
    %c0_132 = arith.constant 0 : index
    %169 = vector.load %arg12[%c12_131, %c0_132] : memref<72x256xf32, #tpu.memory_space<vmem>>, vector<4x256xf32>
    tpu.vector_store %arg12[%c12_131, %c0_132], %168 {strides = array<i32>} : memref<72x256xf32, #tpu.memory_space<vmem>>, vector<4x256xf32>,
    %c0_133 = arith.constant 0 : index
    %c128_134 = arith.constant 128 : index
    %170 = vector.load %arg11[%c0_133, %c128_134] : memref<8x512xf32, #tpu.memory_space<vmem>>, vector<4x256xf32>
    %c16_135 = arith.constant 16 : index
    %c0_136 = arith.constant 0 : index
    %171 = vector.load %arg12[%c16_135, %c0_136] : memref<72x256xf32, #tpu.memory_space<vmem>>, vector<4x256xf32>
    tpu.vector_store %arg12[%c16_135, %c0_136], %170 {strides = array<i32>} : memref<72x256xf32, #tpu.memory_space<vmem>>, vector<4x256xf32>,
    %c0_137 = arith.constant 0 : index
    %c129_138 = arith.constant 129 : index
    %172 = vector.load %arg11[%c0_137, %c129_138] : memref<8x512xf32, #tpu.memory_space<vmem>>, vector<4x256xf32>
    %cst_139 = arith.constant 0.000000e+00 : f32
    %173 = vector.shape_cast %22 : vector<1x256xi1> to vector<1x256xi1>
    %174 = vector.broadcast %173 : vector<1x256xi1> to vector<4x256xi1>
    %175 = vector.broadcast %cst_139 : f32 to vector<4x256xf32>
    %176 = arith.select %174, %172, %175 : vector<4x256xi1>, vector<4x256xf32>
    %c20_140 = arith.constant 20 : index
    %c0_141 = arith.constant 0 : index
    %177 = vector.load %arg12[%c20_140, %c0_141] : memref<72x256xf32, #tpu.memory_space<vmem>>, vector<4x256xf32>
    tpu.vector_store %arg12[%c20_140, %c0_141], %176 {strides = array<i32>} : memref<72x256xf32, #tpu.memory_space<vmem>>, vector<4x256xf32>,
    %c0_142 = arith.constant 0 : index
    %c143_143 = arith.constant 143 : index
    %178 = vector.load %arg11[%c0_142, %c143_143] : memref<8x512xf32, #tpu.memory_space<vmem>>, vector<4x256xf32>
    %cst_144 = arith.constant 0.000000e+00 : f32
    %179 = vector.shape_cast %20 : vector<1x256xi1> to vector<1x256xi1>
    %180 = vector.broadcast %179 : vector<1x256xi1> to vector<4x256xi1>
    %181 = vector.broadcast %cst_144 : f32 to vector<4x256xf32>
    %182 = arith.select %180, %178, %181 : vector<4x256xi1>, vector<4x256xf32>
    %c24_145 = arith.constant 24 : index
    %c0_146 = arith.constant 0 : index
    %183 = vector.load %arg12[%c24_145, %c0_146] : memref<72x256xf32, #tpu.memory_space<vmem>>, vector<4x256xf32>
    tpu.vector_store %arg12[%c24_145, %c0_146], %182 {strides = array<i32>} : memref<72x256xf32, #tpu.memory_space<vmem>>, vector<4x256xf32>,
    %c0_147 = arith.constant 0 : index
    %c144_148 = arith.constant 144 : index
    %184 = vector.load %arg11[%c0_147, %c144_148] : memref<8x512xf32, #tpu.memory_space<vmem>>, vector<4x256xf32>
    %c28_149 = arith.constant 28 : index
    %c0_150 = arith.constant 0 : index
    %185 = vector.load %arg12[%c28_149, %c0_150] : memref<72x256xf32, #tpu.memory_space<vmem>>, vector<4x256xf32>
    tpu.vector_store %arg12[%c28_149, %c0_150], %184 {strides = array<i32>} : memref<72x256xf32, #tpu.memory_space<vmem>>, vector<4x256xf32>,
    %c0_151 = arith.constant 0 : index
    %c145_152 = arith.constant 145 : index
    %186 = vector.load %arg11[%c0_151, %c145_152] : memref<8x512xf32, #tpu.memory_space<vmem>>, vector<4x256xf32>
    %cst_153 = arith.constant 0.000000e+00 : f32
    %187 = vector.shape_cast %22 : vector<1x256xi1> to vector<1x256xi1>
    %188 = vector.broadcast %187 : vector<1x256xi1> to vector<4x256xi1>
    %189 = vector.broadcast %cst_153 : f32 to vector<4x256xf32>
    %190 = arith.select %188, %186, %189 : vector<4x256xi1>, vector<4x256xf32>
    %c32_154 = arith.constant 32 : index
    %c0_155 = arith.constant 0 : index
    %191 = vector.load %arg12[%c32_154, %c0_155] : memref<72x256xf32, #tpu.memory_space<vmem>>, vector<4x256xf32>
    tpu.vector_store %arg12[%c32_154, %c0_155], %190 {strides = array<i32>} : memref<72x256xf32, #tpu.memory_space<vmem>>, vector<4x256xf32>,
    %c0_156 = arith.constant 0 : index
    %c0_157 = arith.constant 0 : index
    %192 = vector.load %arg12[%c0_156, %c0_157] : memref<72x256xf32, #tpu.memory_space<vmem>>, vector<36x256xf32>
    %cst_158 = arith.constant dense<0.000000e+00> : vector<8x256xf32>
    %193 = tpu.matmul %147, %192, %cst_158 {dimension_numbers = #tpu.dot_dimension_numbers<[1], [0], [0], [1], [0, 0, 1, 1], [], []>} : vector<8x36xf32>, vector<36x256xf32>, vector<8x256xf32> -> vector<8x256xf32>
    %194 = vector.broadcast %148 : vector<8x1xf32> to vector<8x256xf32>
    %195 = arith.addf %193, %194 : vector<8x256xf32>
    %cst_159 = arith.constant 0.000000e+00 : f32
    %196 = vector.broadcast %cst_159 : f32 to vector<8x256xf32>
    %197 = arith.maximumf %195, %196 : vector<8x256xf32>
    %c1_160 = arith.constant 1 : index
    %c0_161 = arith.constant 0 : index
    %c0_162 = arith.constant 0 : index
    %198 = vector.load %arg9[%c1_160, %c0_161, %c0_162] : memref<2x8x256xf32, #tpu.memory_space<vmem>>, vector<1x8x256xf32>
    %199 = vector.shape_cast %198 : vector<1x8x256xf32> to vector<8x256xf32>
    %200 = vector.shape_cast %197 : vector<8x256xf32> to vector<1x8x256xf32>
    tpu.vector_store %arg9[%c1_160, %c0_161, %c0_162], %200 {strides = array<i32>} : memref<2x8x256xf32, #tpu.memory_space<vmem>>, vector<1x8x256xf32>,
    %c0_163 = arith.constant 0 : index
    %c0_164 = arith.constant 0 : index
    %201 = vector.load %arg4[%c0_163, %c0_164] : memref<8x72xf32, #tpu.memory_space<vmem>>, vector<8x72xf32>
    %c0_165 = arith.constant 0 : index
    %c0_166 = arith.constant 0 : index
    %202 = vector.load %arg5[%c0_165, %c0_166] : memref<8x1xf32, #tpu.memory_space<vmem>>, vector<8x1xf32>
    %c0_167 = arith.constant 0 : index
    %c128_168 = arith.constant 128 : index
    %203 = vector.load %arg11[%c0_167, %c128_168] : memref<8x512xf32, #tpu.memory_space<vmem>>, vector<8x256xf32>
    tpu.vector_store %arg11[%c0_167, %c128_168], %197 {strides = array<i32>} : memref<8x512xf32, #tpu.memory_space<vmem>>, vector<8x256xf32>,
    %c0_169 = arith.constant 0 : index
    %c111_170 = arith.constant 111 : index
    %204 = vector.load %arg11[%c0_169, %c111_170] : memref<8x512xf32, #tpu.memory_space<vmem>>, vector<8x256xf32>
    %cst_171 = arith.constant 0.000000e+00 : f32
    %205 = vector.shape_cast %20 : vector<1x256xi1> to vector<1x256xi1>
    %206 = vector.broadcast %205 : vector<1x256xi1> to vector<8x256xi1>
    %207 = vector.broadcast %cst_171 : f32 to vector<8x256xf32>
    %208 = arith.select %206, %204, %207 : vector<8x256xi1>, vector<8x256xf32>
    %c0_172 = arith.constant 0 : index
    %c0_173 = arith.constant 0 : index
    %209 = vector.load %arg12[%c0_172, %c0_173] : memref<72x256xf32, #tpu.memory_space<vmem>>, vector<8x256xf32>
    tpu.vector_store %arg12[%c0_172, %c0_173], %208 {strides = array<i32>} : memref<72x256xf32, #tpu.memory_space<vmem>>, vector<8x256xf32>,
    %c0_174 = arith.constant 0 : index
    %c112_175 = arith.constant 112 : index
    %210 = vector.load %arg11[%c0_174, %c112_175] : memref<8x512xf32, #tpu.memory_space<vmem>>, vector<8x256xf32>
    %c8_176 = arith.constant 8 : index
    %c0_177 = arith.constant 0 : index
    %211 = vector.load %arg12[%c8_176, %c0_177] : memref<72x256xf32, #tpu.memory_space<vmem>>, vector<8x256xf32>
    tpu.vector_store %arg12[%c8_176, %c0_177], %210 {strides = array<i32>} : memref<72x256xf32, #tpu.memory_space<vmem>>, vector<8x256xf32>,
    %c0_178 = arith.constant 0 : index
    %c113_179 = arith.constant 113 : index
    %212 = vector.load %arg11[%c0_178, %c113_179] : memref<8x512xf32, #tpu.memory_space<vmem>>, vector<8x256xf32>
    %cst_180 = arith.constant 0.000000e+00 : f32
    %213 = vector.shape_cast %22 : vector<1x256xi1> to vector<1x256xi1>
    %214 = vector.broadcast %213 : vector<1x256xi1> to vector<8x256xi1>
    %215 = vector.broadcast %cst_180 : f32 to vector<8x256xf32>
    %216 = arith.select %214, %212, %215 : vector<8x256xi1>, vector<8x256xf32>
    %c16_181 = arith.constant 16 : index
    %c0_182 = arith.constant 0 : index
    %217 = vector.load %arg12[%c16_181, %c0_182] : memref<72x256xf32, #tpu.memory_space<vmem>>, vector<8x256xf32>
    tpu.vector_store %arg12[%c16_181, %c0_182], %216 {strides = array<i32>} : memref<72x256xf32, #tpu.memory_space<vmem>>, vector<8x256xf32>,
    %c0_183 = arith.constant 0 : index
    %c127_184 = arith.constant 127 : index
    %218 = vector.load %arg11[%c0_183, %c127_184] : memref<8x512xf32, #tpu.memory_space<vmem>>, vector<8x256xf32>
    %cst_185 = arith.constant 0.000000e+00 : f32
    %219 = vector.shape_cast %20 : vector<1x256xi1> to vector<1x256xi1>
    %220 = vector.broadcast %219 : vector<1x256xi1> to vector<8x256xi1>
    %221 = vector.broadcast %cst_185 : f32 to vector<8x256xf32>
    %222 = arith.select %220, %218, %221 : vector<8x256xi1>, vector<8x256xf32>
    %c24_186 = arith.constant 24 : index
    %c0_187 = arith.constant 0 : index
    %223 = vector.load %arg12[%c24_186, %c0_187] : memref<72x256xf32, #tpu.memory_space<vmem>>, vector<8x256xf32>
    tpu.vector_store %arg12[%c24_186, %c0_187], %222 {strides = array<i32>} : memref<72x256xf32, #tpu.memory_space<vmem>>, vector<8x256xf32>,
    %c0_188 = arith.constant 0 : index
    %c128_189 = arith.constant 128 : index
    %224 = vector.load %arg11[%c0_188, %c128_189] : memref<8x512xf32, #tpu.memory_space<vmem>>, vector<8x256xf32>
    %c32_190 = arith.constant 32 : index
    %c0_191 = arith.constant 0 : index
    %225 = vector.load %arg12[%c32_190, %c0_191] : memref<72x256xf32, #tpu.memory_space<vmem>>, vector<8x256xf32>
    tpu.vector_store %arg12[%c32_190, %c0_191], %224 {strides = array<i32>} : memref<72x256xf32, #tpu.memory_space<vmem>>, vector<8x256xf32>,
    %c0_192 = arith.constant 0 : index
    %c129_193 = arith.constant 129 : index
    %226 = vector.load %arg11[%c0_192, %c129_193] : memref<8x512xf32, #tpu.memory_space<vmem>>, vector<8x256xf32>
    %cst_194 = arith.constant 0.000000e+00 : f32
    %227 = vector.shape_cast %22 : vector<1x256xi1> to vector<1x256xi1>
    %228 = vector.broadcast %227 : vector<1x256xi1> to vector<8x256xi1>
    %229 = vector.broadcast %cst_194 : f32 to vector<8x256xf32>
    %230 = arith.select %228, %226, %229 : vector<8x256xi1>, vector<8x256xf32>
    %c40_195 = arith.constant 40 : index
    %c0_196 = arith.constant 0 : index
    %231 = vector.load %arg12[%c40_195, %c0_196] : memref<72x256xf32, #tpu.memory_space<vmem>>, vector<8x256xf32>
    tpu.vector_store %arg12[%c40_195, %c0_196], %230 {strides = array<i32>} : memref<72x256xf32, #tpu.memory_space<vmem>>, vector<8x256xf32>,
    %c0_197 = arith.constant 0 : index
    %c143_198 = arith.constant 143 : index
    %232 = vector.load %arg11[%c0_197, %c143_198] : memref<8x512xf32, #tpu.memory_space<vmem>>, vector<8x256xf32>
    %cst_199 = arith.constant 0.000000e+00 : f32
    %233 = vector.shape_cast %20 : vector<1x256xi1> to vector<1x256xi1>
    %234 = vector.broadcast %233 : vector<1x256xi1> to vector<8x256xi1>
    %235 = vector.broadcast %cst_199 : f32 to vector<8x256xf32>
    %236 = arith.select %234, %232, %235 : vector<8x256xi1>, vector<8x256xf32>
    %c48_200 = arith.constant 48 : index
    %c0_201 = arith.constant 0 : index
    %237 = vector.load %arg12[%c48_200, %c0_201] : memref<72x256xf32, #tpu.memory_space<vmem>>, vector<8x256xf32>
    tpu.vector_store %arg12[%c48_200, %c0_201], %236 {strides = array<i32>} : memref<72x256xf32, #tpu.memory_space<vmem>>, vector<8x256xf32>,
    %c0_202 = arith.constant 0 : index
    %c144_203 = arith.constant 144 : index
    %238 = vector.load %arg11[%c0_202, %c144_203] : memref<8x512xf32, #tpu.memory_space<vmem>>, vector<8x256xf32>
    %c56_204 = arith.constant 56 : index
    %c0_205 = arith.constant 0 : index
    %239 = vector.load %arg12[%c56_204, %c0_205] : memref<72x256xf32, #tpu.memory_space<vmem>>, vector<8x256xf32>
    tpu.vector_store %arg12[%c56_204, %c0_205], %238 {strides = array<i32>} : memref<72x256xf32, #tpu.memory_space<vmem>>, vector<8x256xf32>,
    %c0_206 = arith.constant 0 : index
    %c145_207 = arith.constant 145 : index
    %240 = vector.load %arg11[%c0_206, %c145_207] : memref<8x512xf32, #tpu.memory_space<vmem>>, vector<8x256xf32>
    %cst_208 = arith.constant 0.000000e+00 : f32
    %241 = vector.shape_cast %22 : vector<1x256xi1> to vector<1x256xi1>
    %242 = vector.broadcast %241 : vector<1x256xi1> to vector<8x256xi1>
    %243 = vector.broadcast %cst_208 : f32 to vector<8x256xf32>
    %244 = arith.select %242, %240, %243 : vector<8x256xi1>, vector<8x256xf32>
    %c64_209 = arith.constant 64 : index
    %c0_210 = arith.constant 0 : index
    %245 = vector.load %arg12[%c64_209, %c0_210] : memref<72x256xf32, #tpu.memory_space<vmem>>, vector<8x256xf32>
    tpu.vector_store %arg12[%c64_209, %c0_210], %244 {strides = array<i32>} : memref<72x256xf32, #tpu.memory_space<vmem>>, vector<8x256xf32>,
    %c0_211 = arith.constant 0 : index
    %c0_212 = arith.constant 0 : index
    %246 = vector.load %arg12[%c0_211, %c0_212] : memref<72x256xf32, #tpu.memory_space<vmem>>, vector<72x256xf32>
    %cst_213 = arith.constant dense<0.000000e+00> : vector<8x256xf32>
    %247 = tpu.matmul %201, %246, %cst_213 {dimension_numbers = #tpu.dot_dimension_numbers<[1], [0], [0], [1], [0, 0, 1, 1], [], []>} : vector<8x72xf32>, vector<72x256xf32>, vector<8x256xf32> -> vector<8x256xf32>
    %248 = vector.broadcast %202 : vector<8x1xf32> to vector<8x256xf32>
    %249 = arith.addf %247, %248 : vector<8x256xf32>
    %cst_214 = arith.constant 0.000000e+00 : f32
    %250 = vector.broadcast %cst_214 : f32 to vector<8x256xf32>
    %251 = arith.maximumf %249, %250 : vector<8x256xf32>
    %c1_215 = arith.constant 1 : index
    %c0_216 = arith.constant 0 : index
    %c0_217 = arith.constant 0 : index
    %252 = vector.load %arg10[%c1_215, %c0_216, %c0_217] : memref<2x8x256xf32, #tpu.memory_space<vmem>>, vector<1x8x256xf32>
    %253 = vector.shape_cast %252 : vector<1x8x256xf32> to vector<8x256xf32>
    %254 = vector.shape_cast %251 : vector<8x256xf32> to vector<1x8x256xf32>
    tpu.vector_store %arg10[%c1_215, %c0_216, %c0_217], %254 {strides = array<i32>} : memref<2x8x256xf32, #tpu.memory_space<vmem>>, vector<1x8x256xf32>,
    %cst_218 = arith.constant dense<0.000000e+00> : vector<8xf32>
    %255 = vector.multi_reduction <add>, %251, %cst_218 [1] : vector<8x256xf32> to vector<8xf32>
    %256 = vector.shape_cast %255 : vector<8xf32> to vector<8x1xf32>
    %cst_219 = arith.constant 3.906250e-03 : f32
    %257 = vector.broadcast %cst_219 : f32 to vector<8x1xf32>
    %258 = arith.mulf %256, %257 : vector<8x1xf32>
    %c0_220 = arith.constant 0 : index
    %c0_221 = arith.constant 0 : index
    %259 = vector.load %arg6[%c0_220, %c0_221] : memref<8x10xf32, #tpu.memory_space<vmem>>, vector<8x10xf32>
    %260 = vector.broadcast %258 : vector<8x1xf32> to vector<8x10xf32>
    %261 = arith.mulf %259, %260 : vector<8x10xf32>
    %cst_222 = arith.constant dense<0.000000e+00> : vector<10xf32>
    %262 = vector.multi_reduction <add>, %261, %cst_222 [0] : vector<8x10xf32> to vector<10xf32>
    %263 = vector.shape_cast %262 : vector<10xf32> to vector<1x10xf32>
    %c0_223 = arith.constant 0 : index
    %c0_224 = arith.constant 0 : index
    %264 = vector.load %arg7[%c0_223, %c0_224] : memref<1x10xf32, #tpu.memory_space<vmem>>, vector<1x10xf32>
    %265 = arith.addf %263, %264 : vector<1x10xf32>
    %c1_225 = arith.constant 1 : index
    %c0_226 = arith.constant 0 : index
    %266 = vector.load %arg8[%c1_225, %c0_226] : memref<2x10xf32, #tpu.memory_space<vmem>>, vector<1x10xf32>
    tpu.vector_store %arg8[%c1_225, %c0_226], %265 {strides = array<i32>} : memref<2x10xf32, #tpu.memory_space<vmem>>, vector<1x10xf32>,
    return
  }
  func.func @transform_0(%arg0: i32) -> (i32, i32, i32) {
    %c0_i32 = arith.constant 0 : i32
    %c0_i32_0 = arith.constant 0 : i32
    %c0_i32_1 = arith.constant 0 : i32
    %c0_i32_2 = arith.constant 0 : i32
    return %c0_i32, %c0_i32_0, %c0_i32_1 : i32, i32, i32
  }
  func.func @transform_1(%arg0: i32) -> (i32, i32) {
    %c0_i32 = arith.constant 0 : i32
    %c0_i32_0 = arith.constant 0 : i32
    %c0_i32_1 = arith.constant 0 : i32
    return %c0_i32, %c0_i32_0 : i32, i32
  }
  func.func @transform_2(%arg0: i32) -> (i32, i32) {
    %c0_i32 = arith.constant 0 : i32
    %c0_i32_0 = arith.constant 0 : i32
    %c0_i32_1 = arith.constant 0 : i32
    return %c0_i32, %c0_i32_0 : i32, i32
  }
  func.func @transform_3(%arg0: i32) -> (i32, i32) {
    %c0_i32 = arith.constant 0 : i32
    %c0_i32_0 = arith.constant 0 : i32
    %c0_i32_1 = arith.constant 0 : i32
    return %c0_i32, %c0_i32_0 : i32, i32
  }
  func.func @transform_4(%arg0: i32) -> (i32, i32) {
    %c0_i32 = arith.constant 0 : i32
    %c0_i32_0 = arith.constant 0 : i32
    %c0_i32_1 = arith.constant 0 : i32
    return %c0_i32, %c0_i32_0 : i32, i32
  }
  func.func @transform_5(%arg0: i32) -> (i32, i32) {
    %c0_i32 = arith.constant 0 : i32
    %c0_i32_0 = arith.constant 0 : i32
    %c0_i32_1 = arith.constant 0 : i32
    return %c0_i32, %c0_i32_0 : i32, i32
  }
  func.func @transform_6(%arg0: i32) -> (i32, i32) {
    %c0_i32 = arith.constant 0 : i32
    %c0_i32_0 = arith.constant 0 : i32
    %c0_i32_1 = arith.constant 0 : i32
    return %c0_i32, %c0_i32_0 : i32, i32
  }
  func.func @transform_7(%arg0: i32) -> (i32, i32) {
    %c0_i32 = arith.constant 0 : i32
    %c0_i32_0 = arith.constant 0 : i32
    %c0_i32_1 = arith.constant 0 : i32
    return %c0_i32, %c0_i32_0 : i32, i32
  }
  func.func @transform_8(%arg0: i32) -> (i32, i32, i32) {
    %c0_i32 = arith.constant 0 : i32
    %c0_i32_0 = arith.constant 0 : i32
    %c0_i32_1 = arith.constant 0 : i32
    %c0_i32_2 = arith.constant 0 : i32
    return %c0_i32, %c0_i32_0, %c0_i32_1 : i32, i32, i32
  }
  func.func @transform_9(%arg0: i32) -> (i32, i32, i32) {
    %c0_i32 = arith.constant 0 : i32
    %c0_i32_0 = arith.constant 0 : i32
    %c0_i32_1 = arith.constant 0 : i32
    %c0_i32_2 = arith.constant 0 : i32
    return %c0_i32, %c0_i32_0, %c0_i32_1 : i32, i32, i32
  }
}

</mosaic_0001>

<bundles_post_ra>
// kernel: net_with_auxiliary_outputs_forward.1
= control target key start
LH: loop header
LB: loop body
LE: loop exit
PB: predicated region body
PF: predicated region fallthrough
CT: control target
= control target key end

     0   :  { %v1242_v0 = vmov 0.0   ;;  %s1832_s0 = inlined_call_operand.vmem [shape: f32[2,4,256], index: 0, kind: input, shape index: {}]   ;;  %s1833_s1 = inlined_call_operand.vmem [shape: f32[8,36], index: 1, kind: input, shape index: {}]   ;;  %s1834_s2 = inlined_call_operand.vmem [shape: f32[8,1], index: 2, kind: input, shape index: {}]   ;;  %s1835_s3 = inlined_call_operand.vmem [shape: f32[8,72], index: 3, kind: input, shape index: {}]   ;;  %s1836_s4 = inlined_call_operand.vmem [shape: f32[8,1], index: 4, kind: input, shape index: {}]   ;;  %s1837_s5 = inlined_call_operand.vmem [shape: f32[8,10], index: 5, kind: input, shape index: {}]   ;;  %s1838_s6 = inlined_call_operand.vmem [shape: f32[1,10], index: 6, kind: input, shape index: {}]   ;;  %s1839_s7 = inlined_call_operand.hbm [shape: f32[2,10], index: 7, kind: output, shape index: {0}]   ;;  %s1840_s8 = inlined_call_operand.vmem [shape: f32[2,8,256], index: 8, kind: output, shape index: {1}]   ;;  %s1841_s9 = inlined_call_operand.vmem [shape: f32[2,8,256], index: 9, kind: output, shape index: {2}]  }
   0x1   :  { %33 = vst [vmem:[#allocation2 + $0x8] sm:$0xff] %v1242_v0 }
   0x2   :  { %15 = vsyncpa [#allocation5], 0  ;;  %30 = vst [vmem:[#allocation2 + $0x10] sm:$0xff] %v1242_v0  ;;  %v65_v1 = vld [vmem:[%s1832_s0] sm:$0xff]  ;;  %s1243_s11 = smov 111   ;;  %s1244_s12 = smov 127   ;;  %v34_v36 = vlaneseq }
   0x3   :  { %31 = vst [vmem:[#allocation2] sm:$0xff] %v1242_v0  ;;  %v1133_v4 = vld [vmem:[%s1832_s0 + $0x8] sm:$0xff]  ;;  %s1245_s15 = smov 113   ;;  %s1246_s0 = smov 112   ;;  %vm191_vm0 = vcmask 1039360   ;;  %vm261_vm3 = vcmask 908288  }
   0x4   :  { %32 = vst [vmem:[#allocation2 + $0x18] sm:$0xff] %v1242_v0  ;;  %s1247_s16 = smov 1   ;;  %s1248_s17 = smov 15   ;;  %v35_v37 = vand.u32 127, %v34_v36  ;;  %vm218_vm4 = vcmask 924672   ;;  %vm242_vm6 = vcmask 916480  }
   0x5   :  { %69 = vst [vmem:[#allocation1] ss:$2 sm:$0xff] %v65_v1  ;;  %s1249_s18 = smov 17   ;;  %s1250_s19 = smov 16   ;;  %vm289_vm8 = vcmask 1043456   ;;  %vm160_vm9 = vcmask 7168  }
   0x6   :  { %v36_v39 = vadd.s32 128, %v35_v37  ;;  %v41_v49 = vand.u32 15, %v35_v37  ;;  %vm139_vm10 = vcmask 121856   ;;  %vm92_vm11 = vcmask 138240   ;;  %s1110_s23 = sshll.u32 %s1839_s7, 4  ;;  %s1111_s23 = int_to_ptr.hbm [resolvable:$true] %s1110_s23 }
   0x7   :  { %vm116_vm12 = vcmask 130048   ;;  %vm285_vm13 = vcmask 293888   ;;  %vm527_vm14 = vcmask 588800   ;;  %vm581_vm15 = vcmask 80896  }
   0x8   :  { %v251_v2 = vld [vmem:[#allocation2 + $0x8] sm:$0xf]  ;;  %v48_v40 = vand.u32 15, %v36_v39  ;;  %vm1344_vm2 = vcmp.le.s32.totalorder %v41_v49, 14  ;;  %vm1364_vm7 = vcmp.ge.s32.totalorder %v41_v49, 1 }
   0x9   :  { %v181_v3 = vld [vmem:[#allocation2 + $0x8] sm:$0xf]  ;;  %259 = vrot.lane.b32.xlu1 %v251_v2, %s1243_s11  ;;  %v148_v24 = vld [vmem:[#allocation2 + $0x10] sm:$0xf] }
   0xa   :  { %189 = vrot.lane.b32.xlu2 %v181_v3, %s1244_s12  ;;  %v208_v7 = vld [vmem:[#allocation2 + $0x8] sm:$0xf]  ;;  %v123_v27 = vld [vmem:[#allocation2 + $0x10] sm:$0xf]  ;;  %vm1337_vm1 = vcmp.le.s32.totalorder %v48_v40, 14  ;;  %vm1351_vm5 = vcmp.ge.s32.totalorder %v48_v40, 1 }
   0xb   :  { %v229_v13 = vld [vmem:[#allocation2 + $0x8] sm:$0xf]  ;;  %v76_v32 = vld [vmem:[#allocation2 + $0x10] sm:$0xf] }
   0xc   :  { %v70_v5 = vld.sshfl [vmem:[#allocation1] sm:$0xff pattern:$0x75316420]  ;;  %v71_v6 = vld.sshfl [vmem:[#allocation1 + $0x8] sm:$0xff pattern:$0x75316420] }
   0xd   :  { %74 = vst [vmem:[#allocation2] sm:$0xf] %v70_v5  ;;  %v235_v14 = vrot.slane %v229_v13, 4  ;;  %v101_v33 = vld [vmem:[#allocation2 + $0x10] sm:$0xf] }
   0xe   :  { %75 = vst [vmem:[#allocation2 + $0x18] sm:$0xf] %v71_v6  ;;  %v107_v34 = vrot.slane %v101_v33, 4  ;;  %v666_v33 = vld [vmem:[#allocation2 + $0x10] sm:$0xf] }
   0xf   :  { %598 = vst [vmem:[#allocation1] ss:$2 sm:$0xff] %v1133_v4 }
  0x12   :  { %216 = vrot.lane.b32.xlu2 %v208_v7, %s1245_s15 }
  0x14   :  { %v249_v8 = vld [vmem:[#allocation2] sm:$0xf] }
  0x15   :  { %v179_v9 = vld [vmem:[#allocation2] sm:$0xf]  ;;  %255 = vrot.lane.b32.xlu0 %v249_v8, %s1243_s11  ;;  %v180_v10 = vld [vmem:[#allocation2 + $0x18] sm:$0xf] }
  0x16   :  { %185 = vrot.lane.b32.xlu1 %v179_v9, %s1244_s12  ;;  %v250_v11 = vld [vmem:[#allocation2 + $0x18] sm:$0xf]  ;;  %v206_v17 = vld [vmem:[#allocation2] sm:$0xf] }
  0x17   :  { %v207_v12 = vld [vmem:[#allocation2 + $0x18] sm:$0xf]  ;;  %v227_v18 = vld [vmem:[#allocation2] sm:$0xf] }
  0x18   :  { %v228_v15 = vld [vmem:[#allocation2 + $0x18] sm:$0xf]  ;;  %v233_v20 = vrot.slane %v227_v18, 4  ;;  %v149_v21 = vld [vmem:[#allocation2] sm:$0xf] }
  0x19   :  { %v234_v16 = vrot.slane %v228_v15, 4  ;;  %v150_v19 = vld [vmem:[#allocation2 + $0x18] sm:$0xf]  ;;  %v124_v23 = vld [vmem:[#allocation2] sm:$0xf] }
  0x1a   :  { %187 = vrot.lane.b32.xlu2 %v180_v10, %s1244_s12  ;;  %v125_v22 = vld [vmem:[#allocation2 + $0x18] sm:$0xf]  ;;  %v77_v26 = vld [vmem:[#allocation2] sm:$0xf] }
  0x1b   :  { %v78_v25 = vld [vmem:[#allocation2 + $0x18] sm:$0xf]  ;;  %v102_v30 = vld [vmem:[#allocation2] sm:$0xf] }
  0x1c   :  { %v103_v28 = vld [vmem:[#allocation2 + $0x18] sm:$0xf]  ;;  %v108_v31 = vrot.slane %v102_v30, 4  ;;  %v175_v44 = vld [vmem:[#allocation2] sm:$0xf] }
  0x1d   :  { %257 = vrot.lane.b32.xlu0 %v250_v11, %s1243_s11  ;;  %v109_v29 = vrot.slane %v103_v28, 4  ;;  %177 = vst [vmem:[#allocation3 + $0x20] sm:$0xf] %v175_v44  ;;  %v176_v47 = vld [vmem:[#allocation2 + $0x18] sm:$0xf] }
  0x1e   :  { %214 = vrot.lane.b32.xlu1 %v207_v12, %s1245_s15  ;;  %178 = vst [vmem:[#allocation3 + $0x8] sm:$0xf] %v176_v47  ;;  %v1387_v30 = vld [vmem:[%s1834_s2] sm:$0xff]  ;;  %s1252_s2 = smov [#allocation4]  }
  0x1f   :  { %s1108_s22 = sshll.u32 %s1252_s2, 4  ;;  %s1109_s22 = int_to_ptr.vmem [resolvable:$true] %s1108_s22 }
  0x22   :  { %240 = vrot.lane.b32.xlu2 %v235_v14, %s1246_s0 }
  0x25   :  { %212 = vrot.lane.b32.xlu0 %v206_v17, %s1245_s15 }
  0x26   :  { %238 = vrot.lane.b32.xlu1 %v234_v16, %s1246_s0 }
  0x2a   :  { %158 = vrot.lane.b32.xlu2 %v150_v19, %s1247_s16 }
  0x2d   :  { %236 = vrot.lane.b32.xlu0 %v233_v20, %s1246_s0 }
  0x2e   :  { %156 = vrot.lane.b32.xlu1 %v149_v21, %s1247_s16 }
  0x32   :  { %137 = vrot.lane.b32.xlu2 %v125_v22, %s1248_s17 }
  0x35   :  { %154 = vrot.lane.b32.xlu0 %v148_v24, %s1247_s16 }
  0x36   :  { %135 = vrot.lane.b32.xlu1 %v124_v23, %s1248_s17 }
  0x3a   :  { %90 = vrot.lane.b32.xlu2 %v78_v25, %s1249_s18 }
  0x3d   :  { %133 = vrot.lane.b32.xlu0 %v123_v27, %s1248_s17 }
  0x3e   :  { %88 = vrot.lane.b32.xlu1 %v77_v26, %s1249_s18 }
  0x42   :  { %114 = vrot.lane.b32.xlu2 %v109_v29, %s1250_s19 }
  0x45   :  { %86 = vrot.lane.b32.xlu0 %v76_v32, %s1249_s18  ;;  %v1251_v32 = vmov 0  }
  0x46   :  { %112 = vrot.lane.b32.xlu1 %v108_v31, %s1250_s19  ;;  %1155 = vset.pattern.permute.xlu0 %v1251_v32 }
  0x47   :  { %1171 = vset.pattern.permute.xlu2 %v1251_v32 }
  0x4d   :  { %110 = vrot.lane.b32.xlu0 %v107_v34, %s1250_s19  ;;  %v1156_v34 = vpack.i.bf16 %v666_v33, %v1242_v0 }
  0x4f   :  { %1157 = vrot.lane.b32.xlu1 %v1156_v34, %s1247_s16 }
  0x55   :  { %282 = vperm.xlu0 %1155, %v1387_v30  }
  0x64   :  { %v190_v35 = vpop.permute.xlu2 %189 }
  0x6c   :  { %v217_v38 = vpop.permute.xlu2 %216 }
  0x74   :  { %v188_v41 = vpop.permute.xlu2 %187 }
  0x75   :  { %v193_v43 = vsel %vm191_vm0, %v188_v41, %v190_v35  ;;  %v646_v35 = vld [vmem:[#allocation2 + $0x10] sm:$0xf] }
  0x76   :  { %v197_v45 = vsel %vm1337_vm1, %v193_v43, 0.0  ;;  %v1161_v36 = vpack.i.bf16 %v646_v35, %v1242_v0 }
  0x77   :  { %v201_v46 = vrot.slane %v197_v45, 4  ;;  %v765_v45 = vld [vmem:[#allocation2 + $0x8] sm:$0xf] }
  0x78   :  { %1162 = vrot.lane.b32.xlu2 %v1161_v36, %s1248_s17  ;;  %773 = vrot.lane.b32.xlu1 %v765_v45, %s1243_s11 }
  0x79   :  { %205 = vst [vmem:[#allocation3 + $0x8] sm:$0xf0] %v201_v46 }
  0x7b   :  { %v260_v48 = vpop.permute.xlu1 %259 }
  0x7c   :  { %v241_v56 = vpop.permute.xlu2 %240 }
  0x80   :  { %v275_v17 = vld [vmem:[#allocation3 + $0x8] sm:$0xff]  ;;  %370 = vrot.lane.b32.xlu2 %v1242_v0, %s1250_s19 }
  0x84   :  { %v159_v4 = vpop.permute.xlu2 %158 }
  0x87   :  { %v256_v51 = vpop.permute.xlu0 %255 }
  0x88   :  { %v186_v52 = vpop.permute.xlu1 %185 }
  0x89   :  { %v192_v53 = vsel %vm191_vm0, %v186_v52, %v188_v41 }
  0x8a   :  { %v196_v54 = vsel %vm1344_vm2, %v192_v53, 0.0 }
  0x8b   :  { %v200_v55 = vrot.slane %v196_v54, 4  ;;  %v698_v54 = vld [vmem:[#allocation2 + $0x8] sm:$0xf] }
  0x8c   :  { %v138_v19 = vpop.permute.xlu2 %137  ;;  %706 = vrot.lane.b32.xlu1 %v698_v54, %s1244_s12 }
  0x8d   :  { %204 = vst [vmem:[#allocation3 + $0x20] sm:$0xf0] %v200_v55 }
  0x8f   :  { %v258_v58 = vpop.permute.xlu0 %257 }
  0x90   :  { %v215_v59 = vpop.permute.xlu1 %214  ;;  %v262_v60 = vsel %vm261_vm3, %v256_v51, %v258_v58  ;;  %v263_v61 = vsel %vm261_vm3, %v258_v58, %v260_v48 }
  0x91   :  { %v220_v62 = vsel %vm218_vm4, %v215_v59, %v217_v38  ;;  %v266_v63 = vsel %vm1344_vm2, %v262_v60, 0.0  ;;  %v267_v1 = vsel %vm1337_vm1, %v263_v61, 0.0  ;;  %v724_v60 = vld [vmem:[#allocation2 + $0x8] sm:$0xf] }
  0x92   :  { %v224_v2 = vsel %vm1351_vm5, %v220_v62, 0.0  ;;  %268 = vst [vmem:[#allocation3 + $0x88] sm:$0xf] %v266_v63  ;;  %v744_v62 = vld [vmem:[#allocation2 + $0x8] sm:$0xf] }
  0x93   :  { %269 = vst [vmem:[#allocation3 + $0x40] sm:$0xf] %v267_v1  ;;  %v750_v63 = vrot.slane %v744_v62, 4  ;;  %v605_v1 = vld [vmem:[#allocation2 + $0x10] sm:$0xf] }
  0x94   :  { %226 = vst [vmem:[#allocation3 + $0x80] sm:$0xf] %v224_v2  ;;  %v274_v29 = vld [vmem:[#allocation3 + $0x20] sm:$0xff]  ;;  %v91_v31 = vpop.permute.xlu2 %90  ;;  %732 = vrot.lane.b32.xlu1 %v724_v60, %s1245_s15  ;;  %v1166_v2 = vpack.i.bf16 %v605_v1, %v1242_v0 }
  0x96   :  { %1167 = vrot.lane.b32.xlu2 %v1166_v2, %s1249_s18 }
  0x97   :  { %v213_v5 = vpop.permute.xlu0 %212 }
  0x98   :  { %v239_v6 = vpop.permute.xlu1 %238  ;;  %v219_v7 = vsel %vm218_vm4, %v213_v5, %v215_v59 }
  0x99   :  { %v244_v8 = vsel %vm242_vm6, %v239_v6, %v241_v56  ;;  %v223_v9 = vsel %vm1364_vm7, %v219_v7, 0.0  ;;  %v278_v10 = vld [vmem:[#allocation3 + $0x88] sm:$0xf]  ;;  %v1411_v56 = vld [vmem:[%s1833_s1] sm:$0xff] }
  0x9a   :  { %248 = vst [vmem:[#allocation3 + $0x80] sm:$0xf0] %v244_v8  ;;  %1127 = vmatpush.msk.msra.mxu0 %vm289_vm8, %v278_v10  ;;  %v279_v11 = vld [vmem:[#allocation3 + $0x40] sm:$0xf] }
  0x9b   :  { %225 = vst [vmem:[#allocation3 + $0x70] sm:$0xf] %v223_v9  ;;  %1129 = vmatpush.msk.msra.mxu1 %vm289_vm8, %v279_v11  ;;  %v600_v8 = vld.sshfl [vmem:[#allocation1 + $0x8] sm:$0xff pattern:$0x75316420] }
  0x9c   :  { %v115_v46 = vpop.permute.xlu2 %114  ;;  %755 = vrot.lane.b32.xlu1 %v750_v63, %s1246_s0 }
  0x9f   :  { %v237_v12 = vpop.permute.xlu0 %236 }
  0xa0   :  { %v157_v13 = vpop.permute.xlu1 %156  ;;  %v243_v14 = vsel %vm242_vm6, %v237_v12, %v239_v6  ;;  %v599_v12 = vld.sshfl [vmem:[#allocation1] sm:$0xff pattern:$0x75316420] }
  0xa1   :  { %v162_v15 = vsel %vm160_vm9, %v157_v13, %v159_v4  ;;  %v277_v16 = vld [vmem:[#allocation3 + $0x80] sm:$0xff]  ;;  %247 = vst [vmem:[#allocation3 + $0x70] sm:$0xf0] %v243_v14 }
  0xa2   :  { %v166_v18 = vsel %vm1351_vm5, %v162_v15, 0.0  ;;  %328 = vmatpush.msra.mxu1 %v277_v16 }
  0xa3   :  { %v170_v20 = vrot.slane %v166_v18, 4 }
  0xa4   :  { %329 = vmatpush.msra.mxu1 %v275_v17 }
  0xa5   :  { %174 = vst [vmem:[#allocation3 + $0x58] sm:$0xf0] %v170_v20 }
  0xa7   :  { %v155_v22 = vpop.permute.xlu0 %154 }
  0xa8   :  { %v136_v21 = vpop.permute.xlu1 %135  ;;  %v161_v24 = vsel %vm160_vm9, %v155_v22, %v157_v13  ;;  %v276_v25 = vld [vmem:[#allocation3 + $0x70] sm:$0xff] }
  0xa9   :  { %v141_v23 = vsel %vm139_vm10, %v136_v21, %v138_v19  ;;  %v165_v27 = vsel %vm1364_vm7, %v161_v24, 0.0  ;;  %308 = vmatpush.msra.mxu0 %v276_v25 }
  0xaa   :  { %v145_v26 = vsel %vm1337_vm1, %v141_v23, 0.0  ;;  %v169_v28 = vrot.slane %v165_v27, 4 }
  0xab   :  { %147 = vst [vmem:[#allocation3 + $0x58] sm:$0xf] %v145_v26  ;;  %309 = vmatpush.msra.mxu0 %v274_v29 }
  0xac   :  { %173 = vst [vmem:[#allocation3 + $0x78] sm:$0xf0] %v169_v28  ;;  %v625_v28 = vld [vmem:[#allocation2 + $0x10] sm:$0xf] }
  0xad   :  { %v631_v29 = vrot.slane %v625_v28, 4 }
  0xaf   :  { %v134_v38 = vpop.permute.xlu0 %133 }
  0xb0   :  { %v89_v37 = vpop.permute.xlu1 %88  ;;  %v140_v40 = vsel %vm139_vm10, %v134_v38, %v136_v21 }
  0xb1   :  { %v94_v39 = vsel %vm92_vm11, %v89_v37, %v91_v31  ;;  %v144_v43 = vsel %vm1344_vm2, %v140_v40, 0.0 }
  0xb2   :  { %v98_v41 = vsel %vm1351_vm5, %v94_v39, 0.0  ;;  %v273_v44 = vld [vmem:[#allocation3 + $0x58] sm:$0xff]  ;;  %146 = vst [vmem:[#allocation3 + $0x78] sm:$0xf] %v144_v43 }
  0xb3   :  { %100 = vst [vmem:[#allocation3 + $0x38] sm:$0xf] %v98_v41  ;;  %330 = vmatpush.msra.mxu1 %v273_v44 }
  0xb7   :  { %v87_v48 = vpop.permute.xlu0 %86 }
  0xb8   :  { %v113_v47 = vpop.permute.xlu1 %112  ;;  %v93_v51 = vsel %vm92_vm11, %v87_v48, %v89_v37 }
  0xb9   :  { %v118_v49 = vsel %vm116_vm12, %v113_v47, %v115_v46  ;;  %v97_v52 = vsel %vm1364_vm7, %v93_v51, 0.0  ;;  %v272_v53 = vld [vmem:[#allocation3 + $0x78] sm:$0xff] }
  0xba   :  { %122 = vst [vmem:[#allocation3 + $0x38] sm:$0xf0] %v118_v49  ;;  %310 = vmatpush.msra.mxu0 %v272_v53 }
  0xbb   :  { %99 = vst [vmem:[#allocation3] sm:$0xf] %v97_v52 }
  0xbf   :  { %v111_v55 = vpop.permute.xlu0 %110 }
  0xc0   :  { %v117_v58 = vsel %vm116_vm12, %v111_v55, %v113_v47 }
  0xc1   :  { %v271_v59 = vld [vmem:[#allocation3 + $0x38] sm:$0xff]  ;;  %121 = vst [vmem:[#allocation3] sm:$0xf0] %v117_v58  ;;  %v1471_v32 = vpop.permute.xlu1 %1157 }
  0xc2   :  { %331 = vmatpush.msra.mxu1 %v271_v59  ;;  %v1159_v43 = vunpack.i.l.bf16 %v1471_v32 }
  0xc3   :  { %1130 = vmatmul.msk.f32.vlgmr.msra.gmra.mxu1 %vm285_vm13, %v1411_v56 }
  0xc7   :  { %v283_v4 = vpop.permute.xlu0 %282 }
  0xc8   :  { %v270_v61 = vld [vmem:[#allocation3] sm:$0xff] }
  0xc9   :  { %311 = vmatpush.msra.mxu0 %v270_v61 }
  0xca   :  { %1128 = vmatmul.msk.f32.vlgmr.msra.gmra.mxu0 %vm285_vm13, %v1411_v56 }
  0xd2   :  { %v1475_v34 = vpop.permute.xlu2 %1162 }
  0xd3   :  { %v1164_v54 = vunpack.i.l.bf16 %v1475_v34 }
  0xda   :  { %v371_v39 = vpop.permute.xlu2 %370 }
  0xea   :  { %v1481_v37 = vpop.permute.xlu1 %773 }
  0xf0   :  { %v1490_v41 = vpop.permute.xlu2 %1167 }
  0xfe   :  { %v1488_v40 = vpop.permute.xlu1 %706 }
 0x140   :  { %v333_v5 = vpop.f32.mrf.mxu1 }
 0x141   :  { %v334_v6 = vadd.f32 %v333_v5, %v283_v4  ;;  %v1160_v5 = vunpack.i.h.bf16 %v1471_v32 }
 0x143   :  { %v1422_v7 = vmax.f32 %v334_v6, 0.0 }
 0x145   :  { %339 = vst [vmem:[%s1840_s8 + $0x8] sm:$0xff] %v1422_v7  ;;  %412 = vrot.lane.b32.xlu1 %v1422_v7, %s1247_s16 }
 0x146   :  { %343 = vst [vmem:[#allocation2 + $0x18] sm:$0xff] %v1422_v7 }
 0x147   :  { %604 = vst [vmem:[#allocation2 + $0x18] sm:$0xf] %v600_v8  ;;  %v313_v9 = vpop.f32.mrf.mxu0 }
 0x148   :  { %425 = vst [vmem:[#allocation3 + $0x40] sm:$0xff] %v1422_v7  ;;  %v314_v10 = vadd.f32 %v313_v9, %v283_v4 }
 0x14a   :  { %v1432_v11 = vmax.f32 %v314_v10, 0.0 }
 0x14c   :  { %338 = vst [vmem:[%s1840_s8] sm:$0xff] %v1432_v11  ;;  %410 = vrot.lane.b32.xlu2 %v1432_v11, %s1247_s16  ;;  %390 = vrot.lane.b32.xlu0 %v1432_v11, %s1248_s17 }
 0x14d   :  { %392 = vrot.lane.b32.xlu1 %v1422_v7, %s1248_s17  ;;  %342 = vst [vmem:[#allocation2] sm:$0xff] %v1432_v11 }
 0x14e   :  { %603 = vst [vmem:[#allocation2] sm:$0xf] %v599_v12  ;;  %v764_v16 = vld [vmem:[#allocation2 + $0x18] sm:$0xf] }
 0x14f   :  { %424 = vst [vmem:[#allocation3 + $0x88] sm:$0xff] %v1432_v11  ;;  %v607_v18 = vld [vmem:[#allocation2 + $0x18] sm:$0xf] }
 0x150   :  { %v697_v19 = vld [vmem:[#allocation2 + $0x18] sm:$0xf] }
 0x151   :  { %v627_v21 = vld [vmem:[#allocation2 + $0x18] sm:$0xf] }
 0x152   :  { %v633_v22 = vrot.slane %v627_v21, 4  ;;  %v723_v23 = vld [vmem:[#allocation2 + $0x18] sm:$0xf] }
 0x153   :  { %v648_v24 = vld [vmem:[#allocation2 + $0x18] sm:$0xf] }
 0x154   :  { %372 = vrot.lane.b32.xlu0 %v1432_v11, %s1250_s19  ;;  %v668_v26 = vld [vmem:[#allocation2 + $0x18] sm:$0xf] }
 0x155   :  { %374 = vrot.lane.b32.xlu1 %v1422_v7, %s1250_s19  ;;  %v763_v13 = vld [vmem:[#allocation2] sm:$0xf]  ;;  %v743_v33 = vld [vmem:[#allocation2 + $0x18] sm:$0xf] }
 0x156   :  { %769 = vrot.lane.b32.xlu2 %v763_v13, %s1243_s11  ;;  %v696_v14 = vld [vmem:[#allocation2] sm:$0xf]  ;;  %v749_v35 = vrot.slane %v743_v33, 4  ;;  %v693_v2 = vld [vmem:[#allocation2 + $0x18] sm:$0xf] }
 0x157   :  { %v647_v15 = vld [vmem:[#allocation2] sm:$0xf] }
 0x158   :  { %v722_v17 = vld [vmem:[#allocation2] sm:$0xf] }
 0x159   :  { %v667_v20 = vld [vmem:[#allocation2] sm:$0xf] }
 0x15a   :  { %v742_v25 = vld [vmem:[#allocation2] sm:$0xf] }
 0x15b   :  { %v748_v27 = vrot.slane %v742_v25, 4  ;;  %v606_v31 = vld [vmem:[#allocation2] sm:$0xf] }
 0x15c   :  { %352 = vrot.lane.b32.xlu0 %v1432_v11, %s1249_s18  ;;  %v626_v36 = vld [vmem:[#allocation2] sm:$0xf] }
 0x15d   :  { %354 = vrot.lane.b32.xlu1 %v1422_v7, %s1249_s18  ;;  %v632_v38 = vrot.slane %v626_v36, 4  ;;  %v692_v1 = vld [vmem:[#allocation2] sm:$0xf] }
 0x15e   :  { %702 = vrot.lane.b32.xlu2 %v696_v14, %s1244_s12 }
 0x164   :  { %771 = vrot.lane.b32.xlu0 %v764_v16, %s1243_s11 }
 0x165   :  { %654 = vrot.lane.b32.xlu1 %v647_v15, %s1248_s17  ;;  %v1169_v15 = vunpack.i.l.bf16 %v1490_v41 }
 0x166   :  { %728 = vrot.lane.b32.xlu2 %v722_v17, %s1245_s15 }
 0x16c   :  { %704 = vrot.lane.b32.xlu0 %v697_v19, %s1244_s12 }
 0x16d   :  { %615 = vrot.lane.b32.xlu1 %v607_v18, %s1249_s18 }
 0x16e   :  { %674 = vrot.lane.b32.xlu2 %v667_v20, %s1247_s16 }
 0x174   :  { %730 = vrot.lane.b32.xlu0 %v723_v23, %s1245_s15  ;;  %v1165_v23 = vunpack.i.h.bf16 %v1475_v34 }
 0x175   :  { %638 = vrot.lane.b32.xlu1 %v633_v22, %s1250_s19 }
 0x176   :  { %656 = vrot.lane.b32.xlu2 %v648_v24, %s1248_s17 }
 0x17c   :  { %676 = vrot.lane.b32.xlu0 %v668_v26, %s1247_s16 }
 0x17d   :  { %492 = vrot.lane.b32.xlu1 %v1422_v7, %s1243_s11 }
 0x17e   :  { %751 = vrot.lane.b32.xlu2 %v748_v27, %s1246_s0 }
 0x184   :  { %613 = vrot.lane.b32.xlu0 %v606_v31, %s1249_s18 }
 0x185   :  { %474 = vrot.lane.b32.xlu1 %v1422_v7, %s1246_s0 }
 0x186   :  { %634 = vrot.lane.b32.xlu2 %v631_v29, %s1250_s19 }
 0x18c   :  { %753 = vrot.lane.b32.xlu0 %v749_v35, %s1246_s0 }
 0x18d   :  { %454 = vrot.lane.b32.xlu1 %v1422_v7, %s1245_s15 }
 0x18e   :  { %795 = vperm.xlu2 %1171, %v1387_v30   ;;  %v1496_v30 = vpop.permute.xlu1 %732 }
 0x194   :  { %636 = vrot.lane.b32.xlu0 %v632_v38, %s1250_s19 }
 0x195   :  { %434 = vrot.lane.b32.xlu1 %v1422_v7, %s1244_s12 }
 0x196   :  { %1173 = vrot.lane.b32.xlu2 %v1242_v0, %s1243_s11  ;;  %v1509_v47 = vpop.permute.xlu1 %755 }
 0x19c   :  { %490 = vrot.lane.b32.xlu0 %v1432_v11, %s1243_s11 }
 0x19e   :  { %1178 = vrot.lane.b32.xlu2 %v1242_v0, %s1246_s0 }
 0x1a4   :  { %472 = vrot.lane.b32.xlu0 %v1432_v11, %s1246_s0 }
 0x1a6   :  { %1183 = vrot.lane.b32.xlu2 %v1242_v0, %s1245_s15  ;;  %v411_v44 = vpop.permute.xlu2 %410 }
 0x1a7   :  { %v1504_v45 = vsel %vm160_vm9, %v1159_v43, %v411_v44 }
 0x1a8   :  { %v418_v46 = vsel %vm1364_vm7, %v1504_v45, 0.0 }
 0x1a9   :  { %420 = vst [vmem:[#allocation3 + $0x70] sm:$0xff] %v418_v46 }
 0x1ac   :  { %452 = vrot.lane.b32.xlu0 %v1432_v11, %s1245_s15 }
 0x1ae   :  { %1188 = vrot.lane.b32.xlu2 %v1242_v0, %s1244_s12 }
 0x1b0   :  { %v770_v48 = vpop.permute.xlu2 %769 }
 0x1b4   :  { %432 = vrot.lane.b32.xlu0 %v1432_v11, %s1244_s12 }
 0x1b6   :  { %920 = vrot.lane.b32.xlu2 %v1242_v0, %s1247_s16 }
 0x1b7   :  { %v413_v49 = vpop.permute.xlu1 %412 }
 0x1b8   :  { %v1520_v51 = vsel %vm160_vm9, %v411_v44, %v413_v49  ;;  %v703_v53 = vpop.permute.xlu2 %702 }
 0x1b9   :  { %v419_v52 = vsel %vm1351_vm5, %v1520_v51, 0.0 }
 0x1ba   :  { %421 = vst [vmem:[#allocation3 + $0x80] sm:$0xff] %v419_v52 }
 0x1be   :  { %900 = vrot.lane.b32.xlu2 %v1242_v0, %s1248_s17  ;;  %v391_v58 = vpop.permute.xlu0 %390 }
 0x1bf   :  { %v393_v55 = vpop.permute.xlu1 %392  ;;  %v1529_v59 = vsel %vm139_vm10, %v1164_v54, %v391_v58 }
 0x1c0   :  { %v1532_v60 = vsel %vm139_vm10, %v391_v58, %v393_v55  ;;  %v1534_v61 = vpop.permute.xlu2 %728  ;;  %v398_v62 = vsel %vm1344_vm2, %v1529_v59, 0.0 }
 0x1c1   :  { %v399_v63 = vsel %vm1337_vm1, %v1532_v60, 0.0  ;;  %400 = vst [vmem:[#allocation3 + $0x20] sm:$0xff] %v398_v62 }
 0x1c2   :  { %401 = vst [vmem:[#allocation3 + $0x8] sm:$0xff] %v399_v63 }
 0x1c3   :  { %694 = vst [vmem:[#allocation3 + $0x20] sm:$0xf] %v692_v1 }
 0x1c4   :  { %695 = vst [vmem:[#allocation3 + $0x8] sm:$0xf] %v693_v2 }
 0x1c6   :  { %v373_v6 = vpop.permute.xlu0 %372 }
 0x1c7   :  { %v375_v4 = vpop.permute.xlu1 %374  ;;  %v1544_v8 = vsel %vm116_vm12, %v371_v39, %v373_v6 }
 0x1c8   :  { %v1547_v9 = vsel %vm116_vm12, %v373_v6, %v375_v4  ;;  %v675_v10 = vpop.permute.xlu2 %674  ;;  %380 = vst [vmem:[#allocation3 + $0x78] sm:$0xff] %v1544_v8 }
 0x1c9   :  { %v678_v12 = vsel %vm160_vm9, %v1160_v5, %v675_v10  ;;  %381 = vst [vmem:[#allocation3 + $0x58] sm:$0xff] %v1547_v9 }
 0x1ca   :  { %v682_v13 = vsel %vm1364_vm7, %v678_v12, 0.0 }
 0x1cb   :  { %v686_v14 = vrot.slane %v682_v13, 4 }
 0x1cd   :  { %690 = vst [vmem:[#allocation3 + $0x78] sm:$0xf0] %v686_v14  ;;  %v1170_v14 = vunpack.i.h.bf16 %v1490_v41 }
 0x1ce   :  { %v353_v17 = vpop.permute.xlu0 %352 }
 0x1cf   :  { %v355_v16 = vpop.permute.xlu1 %354  ;;  %v1556_v18 = vsel %vm92_vm11, %v1169_v15, %v353_v17 }
 0x1d0   :  { %v1559_v19 = vsel %vm92_vm11, %v353_v17, %v355_v16  ;;  %v657_v20 = vpop.permute.xlu2 %656  ;;  %v360_v21 = vsel %vm1364_vm7, %v1556_v18, 0.0 }
 0x1d1   :  { %v361_v22 = vsel %vm1351_vm5, %v1559_v19, 0.0  ;;  %362 = vst [vmem:[#allocation3] sm:$0xff] %v360_v21 }
 0x1d2   :  { %363 = vst [vmem:[#allocation3 + $0x38] sm:$0xff] %v361_v22 }
 0x1d6   :  { %v772_v25 = vpop.permute.xlu0 %771 }
 0x1d7   :  { %v655_v24 = vpop.permute.xlu1 %654  ;;  %v775_v28 = vsel %vm261_vm3, %v770_v48, %v772_v25  ;;  %v776_v29 = vsel %vm261_vm3, %v772_v25, %v1481_v37 }
 0x1d8   :  { %v658_v26 = vsel %vm139_vm10, %v1165_v23, %v655_v24  ;;  %v659_v27 = vsel %vm139_vm10, %v655_v24, %v657_v20  ;;  %v752_v31 = vpop.permute.xlu2 %751  ;;  %v779_v33 = vsel %vm1344_vm2, %v775_v28, 0.0  ;;  %v780_v34 = vsel %vm1337_vm1, %v776_v29, 0.0 }
 0x1d9   :  { %v662_v32 = vsel %vm1344_vm2, %v658_v26, 0.0  ;;  %v663_v35 = vsel %vm1337_vm1, %v659_v27, 0.0  ;;  %781 = vst [vmem:[#allocation3 + $0x88] sm:$0xf] %v779_v33 }
 0x1da   :  { %664 = vst [vmem:[#allocation3 + $0x78] sm:$0xf] %v662_v32 }
 0x1db   :  { %782 = vst [vmem:[#allocation3 + $0x40] sm:$0xf] %v780_v34 }
 0x1dc   :  { %665 = vst [vmem:[#allocation3 + $0x58] sm:$0xf] %v663_v35 }
 0x1de   :  { %v705_v38 = vpop.permute.xlu0 %704 }
 0x1df   :  { %v616_v36 = vpop.permute.xlu1 %615  ;;  %v708_v37 = vsel %vm191_vm0, %v703_v53, %v705_v38  ;;  %v709_v39 = vsel %vm191_vm0, %v705_v38, %v1488_v40 }
 0x1e0   :  { %v635_v43 = vpop.permute.xlu2 %634  ;;  %v712_v44 = vsel %vm1344_vm2, %v708_v37, 0.0  ;;  %v713_v46 = vsel %vm1337_vm1, %v709_v39, 0.0  ;;  %v791_v48 = vld [vmem:[#allocation3 + $0x88] sm:$0xf] }
 0x1e1   :  { %v716_v49 = vrot.slane %v712_v44, 4  ;;  %v717_v52 = vrot.slane %v713_v46, 4  ;;  %1134 = vmatpush.msk.msrb.mxu0 %vm289_vm8, %v791_v48  ;;  %v785_v48 = vld [vmem:[#allocation3 + $0x78] sm:$0xff] }
 0x1e2   :  { %v792_v54 = vld [vmem:[#allocation3 + $0x40] sm:$0xf] }
 0x1e3   :  { %1136 = vmatpush.msk.msrb.mxu1 %vm289_vm8, %v792_v54  ;;  %720 = vst [vmem:[#allocation3 + $0x20] sm:$0xf0] %v716_v49 }
 0x1e4   :  { %721 = vst [vmem:[#allocation3 + $0x8] sm:$0xf0] %v717_v52 }
 0x1e6   :  { %v731_v55 = vpop.permute.xlu0 %730 }
 0x1e7   :  { %v639_v53 = vpop.permute.xlu1 %638  ;;  %v734_v40 = vsel %vm218_vm4, %v1534_v61, %v731_v55  ;;  %v735_v58 = vsel %vm218_vm4, %v731_v55, %v1496_v30 }
 0x1e8   :  { %v1594_v62 = vpop.permute.xlu2 %795  ;;  %v738_v63 = vsel %vm1364_vm7, %v734_v40, 0.0  ;;  %v739_v1 = vsel %vm1351_vm5, %v735_v58, 0.0 }
 0x1e9   :  { %740 = vst [vmem:[#allocation3 + $0x70] sm:$0xf] %v738_v63 }
 0x1ea   :  { %741 = vst [vmem:[#allocation3 + $0x80] sm:$0xf] %v739_v1  ;;  %v787_v39 = vld [vmem:[#allocation3 + $0x20] sm:$0xff] }
 0x1eb   :  { %v788_v46 = vld [vmem:[#allocation3 + $0x8] sm:$0xff] }
 0x1ee   :  { %v677_v4 = vpop.permute.xlu0 %676 }
 0x1ef   :  { %v493_v2 = vpop.permute.xlu1 %492  ;;  %v679_v5 = vsel %vm160_vm9, %v675_v10, %v677_v4 }
 0x1f0   :  { %v1601_v6 = vpop.permute.xlu2 %1173  ;;  %v683_v61 = vsel %vm1351_vm5, %v679_v5, 0.0 }
 0x1f1   :  { %v1175_v30 = vunpack.i.l.bf16 %v1601_v6  ;;  %v687_v12 = vrot.slane %v683_v61, 4  ;;  %v1176_v61 = vunpack.i.h.bf16 %v1601_v6 }
 0x1f3   :  { %v497_v13 = vsel %vm261_vm3, %v493_v2, %v1175_v30  ;;  %691 = vst [vmem:[#allocation3 + $0x58] sm:$0xf0] %v687_v12 }
 0x1f4   :  { %1192 = vmatpush.msk.msra.mxu3 %vm1337_vm1, %v497_v13 }
 0x1f6   :  { %v614_v16 = vpop.permute.xlu0 %613 }
 0x1f7   :  { %v475_v15 = vpop.permute.xlu1 %474  ;;  %v617_v10 = vsel %vm92_vm11, %v1170_v14, %v614_v16  ;;  %v618_v20 = vsel %vm92_vm11, %v614_v16, %v616_v36 }
 0x1f8   :  { %v1610_v17 = vpop.permute.xlu2 %1178  ;;  %v621_v22 = vsel %vm1364_vm7, %v617_v10, 0.0  ;;  %v622_v23 = vsel %vm1351_vm5, %v618_v20, 0.0 }
 0x1f9   :  { %v1180_v21 = vunpack.i.l.bf16 %v1610_v17  ;;  %623 = vst [vmem:[#allocation3] sm:$0xf] %v621_v22  ;;  %v1181_v20 = vunpack.i.h.bf16 %v1610_v17 }
 0x1fa   :  { %624 = vst [vmem:[#allocation3 + $0x38] sm:$0xf] %v622_v23 }
 0x1fb   :  { %v479_v24 = vsel %vm242_vm6, %v475_v15, %v1180_v21 }
 0x1fc   :  { %559 = vmatpush.msra.mxu3 %v479_v24 }
 0x1fe   :  { %v754_v41 = vpop.permute.xlu0 %753 }
 0x1ff   :  { %v455_v26 = vpop.permute.xlu1 %454  ;;  %v757_v27 = vsel %vm242_vm6, %v752_v31, %v754_v41  ;;  %v758_v28 = vsel %vm242_vm6, %v754_v41, %v1509_v47 }
 0x200   :  { %v1620_v25 = vpop.permute.xlu2 %1183  ;;  %761 = vst [vmem:[#allocation3 + $0x70] sm:$0xf0] %v757_v27 }
 0x201   :  { %v1185_v29 = vunpack.i.l.bf16 %v1620_v25  ;;  %762 = vst [vmem:[#allocation3 + $0x80] sm:$0xf0] %v758_v28  ;;  %v1186_v1 = vunpack.i.h.bf16 %v1620_v25 }
 0x203   :  { %v459_v32 = vsel %vm218_vm4, %v455_v26, %v1185_v29 }
 0x204   :  { %1193 = vmatpush.msk.msra.mxu3 %vm1351_vm5, %v459_v32 }
 0x206   :  { %v637_v33 = vpop.permute.xlu0 %636 }
 0x207   :  { %v640_v35 = vsel %vm116_vm12, %v635_v43, %v637_v33  ;;  %v641_v36 = vsel %vm116_vm12, %v637_v33, %v639_v53  ;;  %v789_v31 = vld [vmem:[#allocation3 + $0x70] sm:$0xff]  ;;  %v435_v37 = vpop.permute.xlu1 %434  ;;  %v786_v43 = vld [vmem:[#allocation3 + $0x58] sm:$0xff] }
 0x208   :  { %v1629_v34 = vpop.permute.xlu2 %1188  ;;  %644 = vst [vmem:[#allocation3] sm:$0xf0] %v640_v35  ;;  %819 = vmatpush.msrb.mxu0 %v789_v31  ;;  %v790_v47 = vld [vmem:[#allocation3 + $0x80] sm:$0xff] }
 0x209   :  { %v1190_v38 = vunpack.i.l.bf16 %v1629_v34  ;;  %645 = vst [vmem:[#allocation3 + $0x38] sm:$0xf0] %v641_v36  ;;  %839 = vmatpush.msrb.mxu1 %v790_v47  ;;  %v1191_v29 = vunpack.i.h.bf16 %v1629_v34 }
 0x20a   :  { %820 = vmatpush.msrb.mxu0 %v787_v39 }
 0x20b   :  { %v439_v44 = vsel %vm191_vm0, %v435_v37, %v1190_v38  ;;  %840 = vmatpush.msrb.mxu1 %v788_v46 }
 0x20c   :  { %821 = vmatpush.msrb.mxu0 %v785_v48  ;;  %1194 = vmatpush.msk.msra.mxu3 %vm1337_vm1, %v439_v44 }
 0x20d   :  { %841 = vmatpush.msrb.mxu1 %v786_v43 }
 0x20e   :  { %v491_v49 = vpop.permute.xlu0 %490  ;;  %562 = vmatpush.msra.mxu3 %v1422_v7 }
 0x20f   :  { %v496_v52 = vsel %vm261_vm3, %v491_v49, %v493_v2  ;;  %v783_v54 = vld [vmem:[#allocation3] sm:$0xff] }
 0x210   :  { %822 = vmatpush.msrb.mxu0 %v783_v54  ;;  %v784_v53 = vld [vmem:[#allocation3 + $0x38] sm:$0xff]  ;;  %1195 = vmatpush.msk.msra.mxu3 %vm1351_vm5, %v1520_v51 }
 0x211   :  { %842 = vmatpush.msrb.mxu1 %v784_v53  ;;  %1135 = vmatmul.msk.f32.vlgmr.msrb.gmra.mxu0 %vm285_vm13, %v1411_v56 }
 0x212   :  { %1137 = vmatmul.msk.f32.vlgmr.msrb.gmra.mxu1 %vm285_vm13, %v1411_v56  ;;  %1196 = vmatpush.msk.msra.mxu2 %vm1344_vm2, %v496_v52 }
 0x213   :  { %1197 = vmatpush.msk.msra.mxu3 %vm1337_vm1, %v1532_v60  ;;  %v1676_v60 = vld [vmem:[%s1835_s3] sm:$0xff] }
 0x215   :  { %565 = vmatpush.msra.mxu3 %v1547_v9 }
 0x216   :  { %v473_v7 = vpop.permute.xlu0 %472 }
 0x217   :  { %v478_v55 = vsel %vm242_vm6, %v473_v7, %v475_v15  ;;  %1198 = vmatpush.msk.msra.mxu3 %vm1351_vm5, %v1559_v19  ;;  %v341_v19 = vld [vmem:[%s1836_s4] sm:$0xff] }
 0x218   :  { %539 = vmatpush.msra.mxu2 %v478_v55  ;;  %1132 = vmatmul.msk.f32.vlgmr.msra.gmra.mxu3 %vm527_vm14, %v1676_v60 }
 0x21e   :  { %v453_v51 = vpop.permute.xlu0 %452 }
 0x21f   :  { %v458_v56 = vsel %vm218_vm4, %v453_v51, %v455_v26 }
 0x220   :  { %1199 = vmatpush.msk.msra.mxu2 %vm1364_vm7, %v458_v56 }
 0x226   :  { %v433_v40 = vpop.permute.xlu0 %432 }
 0x227   :  { %v438_v58 = vsel %vm191_vm0, %v433_v40, %v435_v37 }
 0x228   :  { %1200 = vmatpush.msk.msra.mxu2 %vm1344_vm2, %v438_v58 }
 0x22a   :  { %542 = vmatpush.msra.mxu2 %v1432_v11 }
 0x22c   :  { %1201 = vmatpush.msk.msra.mxu2 %vm1364_vm7, %v1504_v45 }
 0x22e   :  { %1202 = vmatpush.msk.msra.mxu2 %vm1344_vm2, %v1529_v59 }
 0x230   :  { %545 = vmatpush.msra.mxu2 %v1544_v8 }
 0x232   :  { %1203 = vmatpush.msk.msra.mxu2 %vm1364_vm7, %v1556_v18 }
 0x233   :  { %1131 = vmatmul.msk.f32.vlgmr.msra.gmra.mxu2 %vm527_vm14, %v1676_v60 }
 0x28e   :  { %v824_v11 = vpop.f32.mrf.mxu0 }
 0x28f   :  { %v825_v45 = vadd.f32 %v824_v11, %v1594_v62  ;;  %v844_v59 = vpop.f32.mrf.mxu1  ;;  %v579_v11 = vld [vmem:[%s1837_s5] sm:$0xff] }
 0x290   :  { %v845_v8 = vadd.f32 %v844_v59, %v1594_v62 }
 0x291   :  { %v1684_v9 = vmax.f32 %v825_v45, 0.0 }
 0x292   :  { %v1686_v18 = vmax.f32 %v845_v8, 0.0 }
 0x293   :  { %1138 = vst [vmem:[%s1840_s8 + $0x10] sm:$0xff] %v1684_v9  ;;  %1002 = vrot.lane.b32.xlu0 %v1684_v9, %s1243_s11  ;;  %984 = vrot.lane.b32.xlu2 %v1684_v9, %s1246_s0 }
 0x294   :  { %854 = vst [vmem:[#allocation2] sm:$0xff] %v1684_v9  ;;  %1004 = vrot.lane.b32.xlu1 %v1686_v18, %s1243_s11 }
 0x295   :  { %1139 = vst [vmem:[%s1840_s8 + $0x18] sm:$0xff] %v1686_v18 }
 0x296   :  { %855 = vst [vmem:[#allocation2 + $0x18] sm:$0xff] %v1686_v18 }
 0x297   :  { %936 = vst [vmem:[#allocation3 + $0x88] sm:$0xff] %v1684_v9 }
 0x298   :  { %937 = vst [vmem:[#allocation3 + $0x40] sm:$0xff] %v1686_v18 }
 0x29b   :  { %986 = vrot.lane.b32.xlu0 %v1686_v18, %s1246_s0  ;;  %966 = vrot.lane.b32.xlu2 %v1686_v18, %s1245_s15  ;;  %v568_v16 = vpop.f32.mrf.mxu3 }
 0x29c   :  { %964 = vrot.lane.b32.xlu1 %v1684_v9, %s1245_s15 }
 0x2a3   :  { %882 = vrot.lane.b32.xlu2 %v1242_v0, %s1250_s19  ;;  %944 = vrot.lane.b32.xlu0 %v1684_v9, %s1244_s12 }
 0x2a4   :  { %946 = vrot.lane.b32.xlu1 %v1686_v18, %s1244_s12 }
 0x2ab   :  { %862 = vrot.lane.b32.xlu2 %v1242_v0, %s1249_s18  ;;  %922 = vrot.lane.b32.xlu0 %v1684_v9, %s1247_s16  ;;  %v921_v0 = vpop.permute.xlu2 %920 }
 0x2ac   :  { %924 = vrot.lane.b32.xlu1 %v1686_v18, %s1247_s16 }
 0x2b3   :  { %524 = vperm.xlu2 %1171, %v341_v19   ;;  %902 = vrot.lane.b32.xlu0 %v1684_v9, %s1248_s17  ;;  %v901_v62 = vpop.permute.xlu2 %900 }
 0x2b4   :  { %904 = vrot.lane.b32.xlu1 %v1686_v18, %s1248_s17 }
 0x2b6   :  { %v548_v10 = vpop.f32.mrf.mxu2 }
 0x2bb   :  { %884 = vrot.lane.b32.xlu0 %v1684_v9, %s1250_s19 }
 0x2bc   :  { %886 = vrot.lane.b32.xlu1 %v1686_v18, %s1250_s19 }
 0x2c3   :  { %864 = vrot.lane.b32.xlu0 %v1684_v9, %s1249_s18 }
 0x2c4   :  { %866 = vrot.lane.b32.xlu1 %v1686_v18, %s1249_s18 }
 0x2cb   :  { %1036 = vperm.xlu0 %1155, %v341_v19  }
 0x2ed   :  { %v985_v63 = vpop.permute.xlu2 %984 }
 0x2f5   :  { %v967_v2 = vpop.permute.xlu2 %966 }
 0x2f6   :  { %v971_v4 = vsel %vm218_vm4, %v967_v2, %v1186_v1 }
 0x2fd   :  { %v883_v5 = vpop.permute.xlu2 %882 }
 0x305   :  { %v1742_v30 = vpop.permute.xlu2 %862  ;;  %v1003_v12 = vpop.permute.xlu0 %1002 }
 0x306   :  { %v1005_v13 = vpop.permute.xlu1 %1004 }
 0x307   :  { %v1009_v14 = vsel %vm261_vm3, %v1005_v13, %v1176_v61  ;;  %v1008_v15 = vsel %vm261_vm3, %v1003_v12, %v1005_v13 }
 0x308   :  { %1204 = vmatpush.msk.msrb.mxu2 %vm1344_vm2, %v1008_v15  ;;  %1205 = vmatpush.msk.msrb.mxu3 %vm1337_vm1, %v1009_v14 }
 0x30d   :  { %v525_v21 = vpop.permute.xlu2 %524  ;;  %v987_v6 = vpop.permute.xlu0 %986 }
 0x30e   :  { %v569_v22 = vadd.f32 %v568_v16, %v525_v21  ;;  %v965_v23 = vpop.permute.xlu1 %964  ;;  %v549_v24 = vadd.f32 %v548_v10, %v525_v21  ;;  %v990_v41 = vsel %vm242_vm6, %v985_v63, %v987_v6  ;;  %v991_v25 = vsel %vm242_vm6, %v987_v6, %v1181_v20 }
 0x30f   :  { %v970_v26 = vsel %vm218_vm4, %v965_v23, %v967_v2  ;;  %1050 = vmatpush.msrb.mxu2 %v990_v41  ;;  %1070 = vmatpush.msrb.mxu3 %v991_v25 }
 0x310   :  { %v572_v27 = vmax.f32 %v569_v22, 0.0  ;;  %v571_v28 = vmax.f32 %v549_v24, 0.0  ;;  %v1100_v24 = vld [vmem:[%s1838_s6] sm:$0x1] }
 0x311   :  { %1206 = vmatpush.msk.msrb.mxu2 %vm1364_vm7, %v970_v26  ;;  %1207 = vmatpush.msk.msrb.mxu3 %vm1351_vm5, %v971_v4 }
 0x312   :  { %574 = vst [vmem:[%s1841_s9 + $0x8] sm:$0xff] %v572_v27  ;;  %v575_v17 = vadd.f32 %v572_v27, %v571_v28 }
 0x313   :  { %573 = vst [vmem:[%s1841_s9] sm:$0xff] %v571_v28 }
 0x314   :  { %576 = vadd.xlane.f32.xlu1 %v575_v17 }
 0x315   :  { %v945_v32 = vpop.permute.xlu0 %944 }
 0x316   :  { %v947_v33 = vpop.permute.xlu1 %946 }
 0x317   :  { %v951_v35 = vsel %vm191_vm0, %v947_v33, %v1191_v29  ;;  %v950_v36 = vsel %vm191_vm0, %v945_v32, %v947_v33  ;;  %vm591_vm0 = vcmask 73728  }
 0x318   :  { %1208 = vmatpush.msk.msrb.mxu2 %vm1344_vm2, %v950_v36  ;;  %1209 = vmatpush.msk.msrb.mxu3 %vm1337_vm1, %v951_v35 }
 0x31a   :  { %1053 = vmatpush.msrb.mxu2 %v1684_v9  ;;  %1073 = vmatpush.msrb.mxu3 %v1686_v18 }
 0x31d   :  { %v923_v31 = vpop.permute.xlu0 %922 }
 0x31e   :  { %v925_v38 = vpop.permute.xlu1 %924  ;;  %v926_v34 = vsel %vm160_vm9, %v921_v0, %v923_v31 }
 0x31f   :  { %v927_v47 = vsel %vm160_vm9, %v923_v31, %v925_v38  ;;  %v930_v37 = vsel %vm1364_vm7, %v926_v34, 0.0  ;;  %1210 = vmatpush.msk.msrb.mxu2 %vm1364_vm7, %v926_v34 }
 0x320   :  { %v931_v39 = vsel %vm1351_vm5, %v927_v47, 0.0  ;;  %932 = vst [vmem:[#allocation3 + $0x70] sm:$0xff] %v930_v37  ;;  %1211 = vmatpush.msk.msrb.mxu3 %vm1351_vm5, %v927_v47 }
 0x321   :  { %933 = vst [vmem:[#allocation3 + $0x80] sm:$0xff] %v931_v39 }
 0x325   :  { %v903_v44 = vpop.permute.xlu0 %902 }
 0x326   :  { %v905_v46 = vpop.permute.xlu1 %904  ;;  %v906_v48 = vsel %vm139_vm10, %v901_v62, %v903_v44  ;;  %v589_v62 = vld [vmem:[%s1838_s6] sm:$0x1] }
 0x327   :  { %v907_v43 = vsel %vm139_vm10, %v903_v44, %v905_v46  ;;  %v910_v49 = vsel %vm1344_vm2, %v906_v48, 0.0  ;;  %1212 = vmatpush.msk.msrb.mxu2 %vm1344_vm2, %v906_v48 }
 0x328   :  { %v911_v52 = vsel %vm1337_vm1, %v907_v43, 0.0  ;;  %912 = vst [vmem:[#allocation3 + $0x20] sm:$0xff] %v910_v49  ;;  %1213 = vmatpush.msk.msrb.mxu3 %vm1337_vm1, %v907_v43 }
 0x329   :  { %913 = vst [vmem:[#allocation3 + $0x8] sm:$0xff] %v911_v52 }
 0x32d   :  { %v885_v54 = vpop.permute.xlu0 %884 }
 0x32e   :  { %v887_v53 = vpop.permute.xlu1 %886  ;;  %v888_v7 = vsel %vm116_vm12, %v883_v5, %v885_v54 }
 0x32f   :  { %v889_v55 = vsel %vm116_vm12, %v885_v54, %v887_v53  ;;  %892 = vst [vmem:[#allocation3 + $0x78] sm:$0xff] %v888_v7  ;;  %1056 = vmatpush.msrb.mxu2 %v888_v7 }
 0x330   :  { %893 = vst [vmem:[#allocation3 + $0x58] sm:$0xff] %v889_v55  ;;  %1076 = vmatpush.msrb.mxu3 %v889_v55 }
 0x335   :  { %v865_v51 = vpop.permute.xlu0 %864 }
 0x336   :  { %v867_v56 = vpop.permute.xlu1 %866  ;;  %v868_v50 = vsel %vm92_vm11, %v1742_v30, %v865_v51 }
 0x337   :  { %v869_v40 = vsel %vm92_vm11, %v865_v51, %v867_v56  ;;  %v872_v42 = vsel %vm1364_vm7, %v868_v50, 0.0  ;;  %1214 = vmatpush.msk.msrb.mxu2 %vm1364_vm7, %v868_v50 }
 0x338   :  { %v873_v58 = vsel %vm1351_vm5, %v869_v40, 0.0  ;;  %874 = vst [vmem:[#allocation3] sm:$0xff] %v872_v42  ;;  %1215 = vmatpush.msk.msrb.mxu3 %vm1351_vm5, %v869_v40  ;;  %1140 = vmatmul.msk.f32.vlgmr.msrb.gmra.mxu2 %vm527_vm14, %v1676_v60 }
 0x339   :  { %875 = vst [vmem:[#allocation3 + $0x38] sm:$0xff] %v873_v58  ;;  %1141 = vmatmul.msk.f32.vlgmr.msrb.gmra.mxu3 %vm527_vm14, %v1676_v60 }
 0x33d   :  { %v1037_v1 = vpop.permute.xlu0 %1036 }
 0x387   :  { %v577_v45 = vpop.xlane.xlu1 %576 }
 0x388   :  { %v578_v59 = vmul.f32 0.00390625, %v577_v45 }
 0x38a   :  { %v580_v8 = vmul.f32 %v579_v11, %v578_v59 }
 0x38c   :  { %v582_v3 = vsel %vm581_vm15, %v580_v8, 0.0 }
 0x38d   :  { %v583_v9 = vrot.slane %v582_v3, 4 }
 0x38f   :  { %v584_v18 = vadd.f32 %v583_v9, %v582_v3 }
 0x391   :  { %v585_v57 = vrot.slane %v584_v18, 2 }
 0x393   :  { %v586_v19 = vadd.f32 %v585_v57, %v584_v18 }
 0x395   :  { %v587_v0 = vrot.slane %v586_v19, 1 }
 0x397   :  { %v588_v60 = vadd.f32 %v587_v0, %v586_v19 }
 0x399   :  { %v590_v63 = vadd.f32 %v589_v62, %v588_v60 }
 0x39b   :  { %592 = vst.msk [vmem:[#allocation4] sm:$0x1] %vm591_vm0, %v590_v63 }
 0x3bb   :  { %v1059_v2 = vpop.f32.mrf.mxu2 }
 0x3bc   :  { %v1060_v4 = vadd.f32 %v1059_v2, %v1037_v1  ;;  %v1079_v5 = vpop.f32.mrf.mxu3 }
 0x3bd   :  { %v1080_v61 = vadd.f32 %v1079_v5, %v1037_v1 }
 0x3be   :  { %v1082_v30 = vmax.f32 %v1060_v4, 0.0 }
 0x3bf   :  { %v1083_v12 = vmax.f32 %v1080_v61, 0.0 }
 0x3c0   :  { %1142 = vst [vmem:[%s1841_s9 + $0x10] sm:$0xff] %v1082_v30 }
 0x3c1   :  { %1143 = vst [vmem:[%s1841_s9 + $0x18] sm:$0xff] %v1083_v12  ;;  %v1087_v13 = vadd.f32 %v1083_v12, %v1082_v30 }
 0x3c3   :  { %1088 = vadd.xlane.f32.xlu2 %v1087_v13 }
 0x436   :  { %v1089_v14 = vpop.xlane.xlu2 %1088 }
 0x437   :  { %v1090_v15 = vmul.f32 0.00390625, %v1089_v14 }
 0x439   :  { %v1092_v16 = vmul.f32 %v1090_v15, %v579_v11 }
 0x43b   :  { %v1093_v10 = vsel %vm581_vm15, %v1092_v16, 0.0 }
 0x43c   :  { %v1094_v20 = vrot.slane %v1093_v10, 4 }
 0x43e   :  { %v1095_v21 = vadd.f32 %v1094_v20, %v1093_v10 }
 0x440   :  { %v1096_v6 = vrot.slane %v1095_v21, 2 }
 0x442   :  { %v1097_v22 = vadd.f32 %v1096_v6, %v1095_v21 }
 0x444   :  { %v1098_v23 = vrot.slane %v1097_v22, 1 }
 0x446   :  { %v1099_v41 = vadd.f32 %v1098_v23, %v1097_v22 }
 0x448   :  { %v1101_v25 = vadd.f32 %v1100_v24, %v1099_v41 }
 0x44a   :  { %1102 = vst.msk [vmem:[#allocation4 + $0x1] sm:$0x1] %vm591_vm0, %v1101_v25 }
 0x44b   :  { %1113 = dma.vmem_to_hbm [thread:$0]  %s1109_s22, 32, %s1111_s23, [#allocation5]  }
 0x44c   :  { %1240 = dma.done.wait [#allocation5], 32  }
 0x44d   :  { %1241 = vsyncadd [#allocation5], 4294967264 }
 0x44e   :  { %1126 = vsyncpa [#allocation5], 1 }

</bundles_post_ra>
